<compile_context>
chip_gen: v5e
topology: v5e:2x2
jax: 0.10.0
libtpu: 0.0.40
codegen_flags: <defaults>
</compile_context>

<pallas_src>
import functools

import jax
import jax.numpy as jnp
import numpy as np
from jax.experimental import pallas as pl
from jax.experimental.pallas import tpu as pltpu


def _bigru_recurrence_kernel(gi_ref, whh_ref, bhh_ref,
                             enc_ref, hid_ref, bwd_scr,
                             *, seq, batch, hidden):
    """Fused bidirectional GRU recurrence (serial over time, both dirs per step).

    gi_ref  : (S, B, 6H)  precomputed input projections, packed per step as
                          [r_f, r_b, z_f, z_b, n_f, n_b]; the *_b columns at step t
                          already correspond to original time S-1-t.
    whh_ref : (2H, 6H)    block-diagonal recurrence weight, rows = [h_f | h_b],
                          columns packed like gi.
    bhh_ref : (1, 6H)     recurrence bias, packed like gi.
    enc_ref : (S, B, H)   output: fwd + bwd encoder states (bidirectional sum fused)
    hid_ref : (2, B, H)   output: final hidden per direction
    bwd_scr : (S, B, H)   VMEM scratch: backward-direction states in original time order
    """
    S, B, H = seq, batch, hidden
    w = whh_ref[...]                                     # (2H, 6H), loop-invariant
    b = bhh_ref[...]                                     # (1, 6H)

    h = jnp.zeros((B, 2 * H), jnp.float32)               # [h_fwd | h_bwd]
    for t in range(S):                                    # static unroll (S is small)
        gi = gi_ref[t]                                    # (B, 6H) contiguous slice
        gh = jnp.dot(h, w, preferred_element_type=jnp.float32) + b   # (B, 6H), 1 matmul
        r = jax.nn.sigmoid(gi[:, :2 * H] + gh[:, :2 * H])             # [r_f | r_b]
        z = jax.nn.sigmoid(gi[:, 2 * H:4 * H] + gh[:, 2 * H:4 * H])   # [z_f | z_b]
        n = jnp.tanh(gi[:, 4 * H:] + r * gh[:, 4 * H:])               # [n_f | n_b]
        h = (1.0 - z) * n + z * h                         # PyTorch GRU update
        enc_ref[t] = h[:, :H]                             # fwd state, written directly
        bwd_scr[S - 1 - t] = h[:, H:]                     # bwd state at original time

    # Fused bidirectional sum + final hidden, written once.
    enc_ref[...] = enc_ref[...] + bwd_scr[...]
    hid_ref[0] = h[:, :H]
    hid_ref[1] = h[:, H:]


def encoder_attention_forward(x_tokens, params):
    """Returns (encoder_states, hidden) matching the PyTorch module (bi_dir=True, GRU)."""
    emb = params["embedding"].astype(jnp.float32)        # (V, E)
    w_ih_t = params["w_ih_t"].astype(jnp.float32)        # (2, E, 3H) gate order [r, z, n]
    w_hh_t = params["w_hh_t"].astype(jnp.float32)        # (2, H, 3H)
    b_ih = params["b_ih"].astype(jnp.float32)            # (2, 1, 3H)
    b_hh = params["b_hh"].astype(jnp.float32)            # (2, 1, 3H)

    S, B = x_tokens.shape
    H = w_hh_t.shape[1]

    # ---- Glue (one-time, off the serial chain) -------------------------------
    # Algorithmic fold: dropout(p=0) is identity, so
    #   x_emb @ W_ih^T + b_ih  ==  gather rows of (embedding @ W_ih^T + b_ih).
    table = jnp.einsum('ve,deg->dvg', emb, w_ih_t) + b_ih          # (2, V, 3H)
    gi_f = jnp.take(table[0], x_tokens, axis=0)                    # (S, B, 3H)
    gi_b = jnp.take(table[1], x_tokens[::-1], axis=0)              # (S, B, 3H), time-reversed
    # Gate-major interleave -> columns [r_f, r_b, z_f, z_b, n_f, n_b]
    gi_packed = jnp.concatenate(
        [gi_f.reshape(S, B, 3, H), gi_b.reshape(S, B, 3, H)], axis=-1
    ).reshape(S, B, 6 * H)

    # Block-diagonal recurrence weight: (2H, 6H), rows [h_f | h_b], cols packed as above.
    whh_f = w_hh_t[0].reshape(H, 3, H)
    whh_b = w_hh_t[1].reshape(H, 3, H)
    zblk = jnp.zeros((H, 3, H), jnp.float32)
    w_bd = jnp.concatenate(
        [jnp.concatenate([whh_f, zblk], axis=-1),    # fwd rows feed only *_f columns
         jnp.concatenate([zblk, whh_b], axis=-1)],   # bwd rows feed only *_b columns
        axis=0,
    ).reshape(2 * H, 6 * H)
    b_hh_packed = jnp.concatenate(
        [b_hh[0].reshape(1, 3, H), b_hh[1].reshape(1, 3, H)], axis=-1
    ).reshape(1, 6 * H)
    # ---------------------------------------------------------------------------

    kernel = functools.partial(_bigru_recurrence_kernel, seq=S, batch=B, hidden=H)

    encoder_states, hidden = pl.pallas_call(
        kernel,
        out_shape=(
            jax.ShapeDtypeStruct((S, B, H), jnp.float32),   # fwd + bwd states
            jax.ShapeDtypeStruct((2, B, H), jnp.float32),   # final hidden per direction
        ),
        grid_spec=pltpu.PrefetchScalarGridSpec(
            num_scalar_prefetch=0,
            grid=(1,),                                       # single invocation
            in_specs=[
                pl.BlockSpec((S, B, 6 * H), lambda i: (0, 0, 0)),
                pl.BlockSpec((2 * H, 6 * H), lambda i: (0, 0)),
                pl.BlockSpec((1, 6 * H), lambda i: (0, 0)),
            ],
            out_specs=(
                pl.BlockSpec((S, B, H), lambda i: (0, 0, 0)),
                pl.BlockSpec((2, B, H), lambda i: (0, 0, 0)),
            ),
            scratch_shapes=[
                pltpu.VMEM((S, B, H), jnp.float32),          # backward-direction states
            ],
        ),
        compiler_params=pltpu.CompilerParams(
            dimension_semantics=("arbitrary",),
            vmem_limit_bytes=32 * 1024 * 1024,               # >= default on all generations
        ),
    )(gi_packed, w_bd, b_hh_packed)

    return encoder_states, hidden   # (S, B, H), (2, B, H)


# ---------------- pure-JAX reference (for verification) ----------------
def _gru_direction_ref(x_emb, w_ih, w_hh, b_ih, b_hh, reverse):
    H = w_hh.shape[1]
    xs = x_emb[::-1] if reverse else x_emb

    def step(h, x_t):
        gi = x_t @ w_ih.T + b_ih
        gh = h @ w_hh.T + b_hh
        r = jax.nn.sigmoid(gi[:, :H] + gh[:, :H])
        z = jax.nn.sigmoid(gi[:, H:2 * H] + gh[:, H:2 * H])
        n = jnp.tanh(gi[:, 2 * H:] + r * gh[:, 2 * H:])
        h_new = (1.0 - z) * n + z * h
        return h_new, h_new

    h0 = jnp.zeros((x_emb.shape[1], H), jnp.float32)
    h_last, ys = jax.lax.scan(step, h0, xs)
    if reverse:
        ys = ys[::-1]
    return ys, h_last


def encoder_attention_ref(x_tokens, params):
    emb = params["embedding"]
    x_emb = jnp.take(emb, x_tokens, axis=0).astype(jnp.float32)
    w_ih = jnp.transpose(params["w_ih_t"], (0, 2, 1))   # (2, 3H, E)
    w_hh = jnp.transpose(params["w_hh_t"], (0, 2, 1))   # (2, 3H, H)
    b_ih = params["b_ih"][:, 0]
    b_hh = params["b_hh"][:, 0]
    yf, hf = _gru_direction_ref(x_emb, w_ih[0], w_hh[0], b_ih[0], b_hh[0], reverse=False)
    yb, hb = _gru_direction_ref(x_emb, w_ih[1], w_hh[1], b_ih[1], b_hh[1], reverse=True)
    return yf + yb, jnp.stack([hf, hb], axis=0)


if __name__ == "__main__":
    # Small shapes consistent with the module: vocab V, embed E, hidden H, seq S, batch B
    V, E, H, S, B = 20, 32, 32, 8, 8

    key = jax.random.PRNGKey(0)
    ks = jax.random.split(key, 6)
    bound = 1.0 / np.sqrt(H)

    embedding = jax.random.normal(ks[0], (V, E), jnp.float32)
    w_ih = jax.random.uniform(ks[1], (2, 3 * H, E), jnp.float32, -bound, bound)
    w_hh = jax.random.uniform(ks[2], (2, 3 * H, H), jnp.float32, -bound, bound)
    b_ih = jax.random.uniform(ks[3], (2, 3 * H), jnp.float32, -bound, bound)
    b_hh = jax.random.uniform(ks[4], (2, 3 * H), jnp.float32, -bound, bound)
    x_tokens = jax.random.randint(ks[5], (S, B), 0, V, jnp.int32)

    params = {
        "embedding": embedding,
        "w_ih_t": jnp.transpose(w_ih, (0, 2, 1)),    # (2, E, 3H)
        "w_hh_t": jnp.transpose(w_hh, (0, 2, 1)),    # (2, H, 3H)
        "b_ih": b_ih.reshape(2, 1, 3 * H),
        "b_hh": b_hh.reshape(2, 1, 3 * H),
    }

    enc, hid = jax.jit(encoder_attention_forward)(x_tokens, params)
    enc = jax.block_until_ready(enc)
    hid = jax.block_until_ready(hid)

    enc_ref, hid_ref = encoder_attention_ref(x_tokens, params)
    np.testing.assert_allclose(np.asarray(enc), np.asarray(enc_ref), atol=1e-4, rtol=1e-4)
    np.testing.assert_allclose(np.asarray(hid), np.asarray(hid_ref), atol=1e-4, rtol=1e-4)

    print("KERNEL_OK")
</pallas_src>

<mosaic_0001>
module attributes {stable_mosaic.version = 11 : i64} {
  func.func @_bigru_recurrence_kernel(%arg0: i32, %arg1: memref<8x8x192xf32, #tpu.memory_space<vmem>>, %arg2: memref<64x192xf32, #tpu.memory_space<vmem>>, %arg3: memref<1x192xf32, #tpu.memory_space<vmem>>, %arg4: memref<8x8x32xf32, #tpu.memory_space<vmem>>, %arg5: memref<2x8x32xf32, #tpu.memory_space<vmem>>, %arg6: memref<8x8x32xf32, #tpu.memory_space<vmem>>) attributes {dimension_semantics = [#tpu.dimension_semantics<arbitrary>], iteration_bounds = array<i64: 1>, scalar_prefetch = 0 : i64, scratch_operands = 1 : i64, tpu.core_type = #tpu.core_type<tc>, window_params = [{pipeline_mode = #tpu.pipeline_mode<synchronous>, transform_indices = @transform_0, window_bounds = array<i64: 8, 8, 192>}, {pipeline_mode = #tpu.pipeline_mode<synchronous>, transform_indices = @transform_1, window_bounds = array<i64: 64, 192>}, {pipeline_mode = #tpu.pipeline_mode<synchronous>, transform_indices = @transform_2, window_bounds = array<i64: 1, 192>}, {pipeline_mode = #tpu.pipeline_mode<synchronous>, transform_indices = @transform_3, window_bounds = array<i64: 8, 8, 32>}, {pipeline_mode = #tpu.pipeline_mode<synchronous>, transform_indices = @transform_4, window_bounds = array<i64: 2, 8, 32>}]} {
    %c0 = arith.constant 0 : index
    %c0_0 = arith.constant 0 : index
    %0 = vector.load %arg2[%c0, %c0_0] : memref<64x192xf32, #tpu.memory_space<vmem>>, vector<64x192xf32>
    %c0_1 = arith.constant 0 : index
    %c0_2 = arith.constant 0 : index
    %1 = vector.load %arg3[%c0_1, %c0_2] : memref<1x192xf32, #tpu.memory_space<vmem>>, vector<1x192xf32>
    %cst = arith.constant 0.000000e+00 : f32
    %2 = vector.broadcast %cst : f32 to vector<8x64xf32>
    %c0_3 = arith.constant 0 : index
    %c0_4 = arith.constant 0 : index
    %c0_5 = arith.constant 0 : index
    %3 = vector.load %arg1[%c0_3, %c0_4, %c0_5] : memref<8x8x192xf32, #tpu.memory_space<vmem>>, vector<1x8x192xf32>
    %4 = vector.shape_cast %3 : vector<1x8x192xf32> to vector<8x192xf32>
    %cst_6 = arith.constant dense<0.000000e+00> : vector<8x192xf32>
    %5 = tpu.matmul %2, %0, %cst_6 {dimension_numbers = #tpu.dot_dimension_numbers<[1], [0], [0], [1], [0, 0, 1, 1], [], []>} : vector<8x64xf32>, vector<64x192xf32>, vector<8x192xf32> -> vector<8x192xf32>
    %6 = vector.broadcast %1 : vector<1x192xf32> to vector<8x192xf32>
    %7 = arith.addf %5, %6 : vector<8x192xf32>
    %8 = vector.extract_strided_slice %4 {offsets = [0, 0], sizes = [8, 64], strides = [1, 1]} : vector<8x192xf32> to vector<8x64xf32>
    %9 = vector.extract_strided_slice %7 {offsets = [0, 0], sizes = [8, 64], strides = [1, 1]} : vector<8x192xf32> to vector<8x64xf32>
    %10 = arith.addf %8, %9 : vector<8x64xf32>
    %11 = arith.negf %10 : vector<8x64xf32>
    %12 = math.exp %11 : vector<8x64xf32>
    %cst_7 = arith.constant 1.000000e+00 : f32
    %13 = vector.broadcast %cst_7 : f32 to vector<8x64xf32>
    %14 = arith.addf %13, %12 : vector<8x64xf32>
    %15 = arith.divf %13, %14 : vector<8x64xf32>
    %16 = vector.extract_strided_slice %4 {offsets = [0, 64], sizes = [8, 64], strides = [1, 1]} : vector<8x192xf32> to vector<8x64xf32>
    %17 = vector.extract_strided_slice %7 {offsets = [0, 64], sizes = [8, 64], strides = [1, 1]} : vector<8x192xf32> to vector<8x64xf32>
    %18 = arith.addf %16, %17 : vector<8x64xf32>
    %19 = arith.negf %18 : vector<8x64xf32>
    %20 = math.exp %19 : vector<8x64xf32>
    %cst_8 = arith.constant 1.000000e+00 : f32
    %21 = vector.broadcast %cst_8 : f32 to vector<8x64xf32>
    %22 = arith.addf %21, %20 : vector<8x64xf32>
    %23 = arith.divf %21, %22 : vector<8x64xf32>
    %24 = vector.extract_strided_slice %4 {offsets = [0, 128], sizes = [8, 64], strides = [1, 1]} : vector<8x192xf32> to vector<8x64xf32>
    %25 = vector.extract_strided_slice %7 {offsets = [0, 128], sizes = [8, 64], strides = [1, 1]} : vector<8x192xf32> to vector<8x64xf32>
    %26 = arith.mulf %15, %25 : vector<8x64xf32>
    %27 = arith.addf %24, %26 : vector<8x64xf32>
    %28 = math.tanh %27 : vector<8x64xf32>
    %cst_9 = arith.constant 1.000000e+00 : f32
    %29 = vector.broadcast %cst_9 : f32 to vector<8x64xf32>
    %30 = arith.subf %29, %23 : vector<8x64xf32>
    %31 = arith.mulf %30, %28 : vector<8x64xf32>
    %32 = arith.mulf %23, %2 : vector<8x64xf32>
    %33 = arith.addf %31, %32 : vector<8x64xf32>
    %34 = vector.extract_strided_slice %33 {offsets = [0, 0], sizes = [8, 32], strides = [1, 1]} : vector<8x64xf32> to vector<8x32xf32>
    %c0_10 = arith.constant 0 : index
    %c0_11 = arith.constant 0 : index
    %c0_12 = arith.constant 0 : index
    %35 = vector.load %arg4[%c0_10, %c0_11, %c0_12] : memref<8x8x32xf32, #tpu.memory_space<vmem>>, vector<1x8x32xf32>
    %36 = vector.shape_cast %35 : vector<1x8x32xf32> to vector<8x32xf32>
    %37 = vector.shape_cast %34 : vector<8x32xf32> to vector<1x8x32xf32>
    tpu.vector_store %arg4[%c0_10, %c0_11, %c0_12], %37 {strides = array<i32>} : memref<8x8x32xf32, #tpu.memory_space<vmem>>, vector<1x8x32xf32>,
    %38 = vector.extract_strided_slice %33 {offsets = [0, 32], sizes = [8, 32], strides = [1, 1]} : vector<8x64xf32> to vector<8x32xf32>
    %c7 = arith.constant 7 : index
    %c0_13 = arith.constant 0 : index
    %c0_14 = arith.constant 0 : index
    %39 = vector.load %arg6[%c7, %c0_13, %c0_14] : memref<8x8x32xf32, #tpu.memory_space<vmem>>, vector<1x8x32xf32>
    %40 = vector.shape_cast %39 : vector<1x8x32xf32> to vector<8x32xf32>
    %41 = vector.shape_cast %38 : vector<8x32xf32> to vector<1x8x32xf32>
    tpu.vector_store %arg6[%c7, %c0_13, %c0_14], %41 {strides = array<i32>} : memref<8x8x32xf32, #tpu.memory_space<vmem>>, vector<1x8x32xf32>,
    %c1 = arith.constant 1 : index
    %c0_15 = arith.constant 0 : index
    %c0_16 = arith.constant 0 : index
    %42 = vector.load %arg1[%c1, %c0_15, %c0_16] : memref<8x8x192xf32, #tpu.memory_space<vmem>>, vector<1x8x192xf32>
    %43 = vector.shape_cast %42 : vector<1x8x192xf32> to vector<8x192xf32>
    %cst_17 = arith.constant dense<0.000000e+00> : vector<8x192xf32>
    %44 = tpu.matmul %33, %0, %cst_17 {dimension_numbers = #tpu.dot_dimension_numbers<[1], [0], [0], [1], [0, 0, 1, 1], [], []>} : vector<8x64xf32>, vector<64x192xf32>, vector<8x192xf32> -> vector<8x192xf32>
    %45 = vector.broadcast %1 : vector<1x192xf32> to vector<8x192xf32>
    %46 = arith.addf %44, %45 : vector<8x192xf32>
    %47 = vector.extract_strided_slice %43 {offsets = [0, 0], sizes = [8, 64], strides = [1, 1]} : vector<8x192xf32> to vector<8x64xf32>
    %48 = vector.extract_strided_slice %46 {offsets = [0, 0], sizes = [8, 64], strides = [1, 1]} : vector<8x192xf32> to vector<8x64xf32>
    %49 = arith.addf %47, %48 : vector<8x64xf32>
    %50 = arith.negf %49 : vector<8x64xf32>
    %51 = math.exp %50 : vector<8x64xf32>
    %cst_18 = arith.constant 1.000000e+00 : f32
    %52 = vector.broadcast %cst_18 : f32 to vector<8x64xf32>
    %53 = arith.addf %52, %51 : vector<8x64xf32>
    %54 = arith.divf %52, %53 : vector<8x64xf32>
    %55 = vector.extract_strided_slice %43 {offsets = [0, 64], sizes = [8, 64], strides = [1, 1]} : vector<8x192xf32> to vector<8x64xf32>
    %56 = vector.extract_strided_slice %46 {offsets = [0, 64], sizes = [8, 64], strides = [1, 1]} : vector<8x192xf32> to vector<8x64xf32>
    %57 = arith.addf %55, %56 : vector<8x64xf32>
    %58 = arith.negf %57 : vector<8x64xf32>
    %59 = math.exp %58 : vector<8x64xf32>
    %cst_19 = arith.constant 1.000000e+00 : f32
    %60 = vector.broadcast %cst_19 : f32 to vector<8x64xf32>
    %61 = arith.addf %60, %59 : vector<8x64xf32>
    %62 = arith.divf %60, %61 : vector<8x64xf32>
    %63 = vector.extract_strided_slice %43 {offsets = [0, 128], sizes = [8, 64], strides = [1, 1]} : vector<8x192xf32> to vector<8x64xf32>
    %64 = vector.extract_strided_slice %46 {offsets = [0, 128], sizes = [8, 64], strides = [1, 1]} : vector<8x192xf32> to vector<8x64xf32>
    %65 = arith.mulf %54, %64 : vector<8x64xf32>
    %66 = arith.addf %63, %65 : vector<8x64xf32>
    %67 = math.tanh %66 : vector<8x64xf32>
    %cst_20 = arith.constant 1.000000e+00 : f32
    %68 = vector.broadcast %cst_20 : f32 to vector<8x64xf32>
    %69 = arith.subf %68, %62 : vector<8x64xf32>
    %70 = arith.mulf %69, %67 : vector<8x64xf32>
    %71 = arith.mulf %62, %33 : vector<8x64xf32>
    %72 = arith.addf %70, %71 : vector<8x64xf32>
    %73 = vector.extract_strided_slice %72 {offsets = [0, 0], sizes = [8, 32], strides = [1, 1]} : vector<8x64xf32> to vector<8x32xf32>
    %c1_21 = arith.constant 1 : index
    %c0_22 = arith.constant 0 : index
    %c0_23 = arith.constant 0 : index
    %74 = vector.load %arg4[%c1_21, %c0_22, %c0_23] : memref<8x8x32xf32, #tpu.memory_space<vmem>>, vector<1x8x32xf32>
    %75 = vector.shape_cast %74 : vector<1x8x32xf32> to vector<8x32xf32>
    %76 = vector.shape_cast %73 : vector<8x32xf32> to vector<1x8x32xf32>
    tpu.vector_store %arg4[%c1_21, %c0_22, %c0_23], %76 {strides = array<i32>} : memref<8x8x32xf32, #tpu.memory_space<vmem>>, vector<1x8x32xf32>,
    %77 = vector.extract_strided_slice %72 {offsets = [0, 32], sizes = [8, 32], strides = [1, 1]} : vector<8x64xf32> to vector<8x32xf32>
    %c6 = arith.constant 6 : index
    %c0_24 = arith.constant 0 : index
    %c0_25 = arith.constant 0 : index
    %78 = vector.load %arg6[%c6, %c0_24, %c0_25] : memref<8x8x32xf32, #tpu.memory_space<vmem>>, vector<1x8x32xf32>
    %79 = vector.shape_cast %78 : vector<1x8x32xf32> to vector<8x32xf32>
    %80 = vector.shape_cast %77 : vector<8x32xf32> to vector<1x8x32xf32>
    tpu.vector_store %arg6[%c6, %c0_24, %c0_25], %80 {strides = array<i32>} : memref<8x8x32xf32, #tpu.memory_space<vmem>>, vector<1x8x32xf32>,
    %c2 = arith.constant 2 : index
    %c0_26 = arith.constant 0 : index
    %c0_27 = arith.constant 0 : index
    %81 = vector.load %arg1[%c2, %c0_26, %c0_27] : memref<8x8x192xf32, #tpu.memory_space<vmem>>, vector<1x8x192xf32>
    %82 = vector.shape_cast %81 : vector<1x8x192xf32> to vector<8x192xf32>
    %cst_28 = arith.constant dense<0.000000e+00> : vector<8x192xf32>
    %83 = tpu.matmul %72, %0, %cst_28 {dimension_numbers = #tpu.dot_dimension_numbers<[1], [0], [0], [1], [0, 0, 1, 1], [], []>} : vector<8x64xf32>, vector<64x192xf32>, vector<8x192xf32> -> vector<8x192xf32>
    %84 = vector.broadcast %1 : vector<1x192xf32> to vector<8x192xf32>
    %85 = arith.addf %83, %84 : vector<8x192xf32>
    %86 = vector.extract_strided_slice %82 {offsets = [0, 0], sizes = [8, 64], strides = [1, 1]} : vector<8x192xf32> to vector<8x64xf32>
    %87 = vector.extract_strided_slice %85 {offsets = [0, 0], sizes = [8, 64], strides = [1, 1]} : vector<8x192xf32> to vector<8x64xf32>
    %88 = arith.addf %86, %87 : vector<8x64xf32>
    %89 = arith.negf %88 : vector<8x64xf32>
    %90 = math.exp %89 : vector<8x64xf32>
    %cst_29 = arith.constant 1.000000e+00 : f32
    %91 = vector.broadcast %cst_29 : f32 to vector<8x64xf32>
    %92 = arith.addf %91, %90 : vector<8x64xf32>
    %93 = arith.divf %91, %92 : vector<8x64xf32>
    %94 = vector.extract_strided_slice %82 {offsets = [0, 64], sizes = [8, 64], strides = [1, 1]} : vector<8x192xf32> to vector<8x64xf32>
    %95 = vector.extract_strided_slice %85 {offsets = [0, 64], sizes = [8, 64], strides = [1, 1]} : vector<8x192xf32> to vector<8x64xf32>
    %96 = arith.addf %94, %95 : vector<8x64xf32>
    %97 = arith.negf %96 : vector<8x64xf32>
    %98 = math.exp %97 : vector<8x64xf32>
    %cst_30 = arith.constant 1.000000e+00 : f32
    %99 = vector.broadcast %cst_30 : f32 to vector<8x64xf32>
    %100 = arith.addf %99, %98 : vector<8x64xf32>
    %101 = arith.divf %99, %100 : vector<8x64xf32>
    %102 = vector.extract_strided_slice %82 {offsets = [0, 128], sizes = [8, 64], strides = [1, 1]} : vector<8x192xf32> to vector<8x64xf32>
    %103 = vector.extract_strided_slice %85 {offsets = [0, 128], sizes = [8, 64], strides = [1, 1]} : vector<8x192xf32> to vector<8x64xf32>
    %104 = arith.mulf %93, %103 : vector<8x64xf32>
    %105 = arith.addf %102, %104 : vector<8x64xf32>
    %106 = math.tanh %105 : vector<8x64xf32>
    %cst_31 = arith.constant 1.000000e+00 : f32
    %107 = vector.broadcast %cst_31 : f32 to vector<8x64xf32>
    %108 = arith.subf %107, %101 : vector<8x64xf32>
    %109 = arith.mulf %108, %106 : vector<8x64xf32>
    %110 = arith.mulf %101, %72 : vector<8x64xf32>
    %111 = arith.addf %109, %110 : vector<8x64xf32>
    %112 = vector.extract_strided_slice %111 {offsets = [0, 0], sizes = [8, 32], strides = [1, 1]} : vector<8x64xf32> to vector<8x32xf32>
    %c2_32 = arith.constant 2 : index
    %c0_33 = arith.constant 0 : index
    %c0_34 = arith.constant 0 : index
    %113 = vector.load %arg4[%c2_32, %c0_33, %c0_34] : memref<8x8x32xf32, #tpu.memory_space<vmem>>, vector<1x8x32xf32>
    %114 = vector.shape_cast %113 : vector<1x8x32xf32> to vector<8x32xf32>
    %115 = vector.shape_cast %112 : vector<8x32xf32> to vector<1x8x32xf32>
    tpu.vector_store %arg4[%c2_32, %c0_33, %c0_34], %115 {strides = array<i32>} : memref<8x8x32xf32, #tpu.memory_space<vmem>>, vector<1x8x32xf32>,
    %116 = vector.extract_strided_slice %111 {offsets = [0, 32], sizes = [8, 32], strides = [1, 1]} : vector<8x64xf32> to vector<8x32xf32>
    %c5 = arith.constant 5 : index
    %c0_35 = arith.constant 0 : index
    %c0_36 = arith.constant 0 : index
    %117 = vector.load %arg6[%c5, %c0_35, %c0_36] : memref<8x8x32xf32, #tpu.memory_space<vmem>>, vector<1x8x32xf32>
    %118 = vector.shape_cast %117 : vector<1x8x32xf32> to vector<8x32xf32>
    %119 = vector.shape_cast %116 : vector<8x32xf32> to vector<1x8x32xf32>
    tpu.vector_store %arg6[%c5, %c0_35, %c0_36], %119 {strides = array<i32>} : memref<8x8x32xf32, #tpu.memory_space<vmem>>, vector<1x8x32xf32>,
    %c3 = arith.constant 3 : index
    %c0_37 = arith.constant 0 : index
    %c0_38 = arith.constant 0 : index
    %120 = vector.load %arg1[%c3, %c0_37, %c0_38] : memref<8x8x192xf32, #tpu.memory_space<vmem>>, vector<1x8x192xf32>
    %121 = vector.shape_cast %120 : vector<1x8x192xf32> to vector<8x192xf32>
    %cst_39 = arith.constant dense<0.000000e+00> : vector<8x192xf32>
    %122 = tpu.matmul %111, %0, %cst_39 {dimension_numbers = #tpu.dot_dimension_numbers<[1], [0], [0], [1], [0, 0, 1, 1], [], []>} : vector<8x64xf32>, vector<64x192xf32>, vector<8x192xf32> -> vector<8x192xf32>
    %123 = vector.broadcast %1 : vector<1x192xf32> to vector<8x192xf32>
    %124 = arith.addf %122, %123 : vector<8x192xf32>
    %125 = vector.extract_strided_slice %121 {offsets = [0, 0], sizes = [8, 64], strides = [1, 1]} : vector<8x192xf32> to vector<8x64xf32>
    %126 = vector.extract_strided_slice %124 {offsets = [0, 0], sizes = [8, 64], strides = [1, 1]} : vector<8x192xf32> to vector<8x64xf32>
    %127 = arith.addf %125, %126 : vector<8x64xf32>
    %128 = arith.negf %127 : vector<8x64xf32>
    %129 = math.exp %128 : vector<8x64xf32>
    %cst_40 = arith.constant 1.000000e+00 : f32
    %130 = vector.broadcast %cst_40 : f32 to vector<8x64xf32>
    %131 = arith.addf %130, %129 : vector<8x64xf32>
    %132 = arith.divf %130, %131 : vector<8x64xf32>
    %133 = vector.extract_strided_slice %121 {offsets = [0, 64], sizes = [8, 64], strides = [1, 1]} : vector<8x192xf32> to vector<8x64xf32>
    %134 = vector.extract_strided_slice %124 {offsets = [0, 64], sizes = [8, 64], strides = [1, 1]} : vector<8x192xf32> to vector<8x64xf32>
    %135 = arith.addf %133, %134 : vector<8x64xf32>
    %136 = arith.negf %135 : vector<8x64xf32>
    %137 = math.exp %136 : vector<8x64xf32>
    %cst_41 = arith.constant 1.000000e+00 : f32
    %138 = vector.broadcast %cst_41 : f32 to vector<8x64xf32>
    %139 = arith.addf %138, %137 : vector<8x64xf32>
    %140 = arith.divf %138, %139 : vector<8x64xf32>
    %141 = vector.extract_strided_slice %121 {offsets = [0, 128], sizes = [8, 64], strides = [1, 1]} : vector<8x192xf32> to vector<8x64xf32>
    %142 = vector.extract_strided_slice %124 {offsets = [0, 128], sizes = [8, 64], strides = [1, 1]} : vector<8x192xf32> to vector<8x64xf32>
    %143 = arith.mulf %132, %142 : vector<8x64xf32>
    %144 = arith.addf %141, %143 : vector<8x64xf32>
    %145 = math.tanh %144 : vector<8x64xf32>
    %cst_42 = arith.constant 1.000000e+00 : f32
    %146 = vector.broadcast %cst_42 : f32 to vector<8x64xf32>
    %147 = arith.subf %146, %140 : vector<8x64xf32>
    %148 = arith.mulf %147, %145 : vector<8x64xf32>
    %149 = arith.mulf %140, %111 : vector<8x64xf32>
    %150 = arith.addf %148, %149 : vector<8x64xf32>
    %151 = vector.extract_strided_slice %150 {offsets = [0, 0], sizes = [8, 32], strides = [1, 1]} : vector<8x64xf32> to vector<8x32xf32>
    %c3_43 = arith.constant 3 : index
    %c0_44 = arith.constant 0 : index
    %c0_45 = arith.constant 0 : index
    %152 = vector.load %arg4[%c3_43, %c0_44, %c0_45] : memref<8x8x32xf32, #tpu.memory_space<vmem>>, vector<1x8x32xf32>
    %153 = vector.shape_cast %152 : vector<1x8x32xf32> to vector<8x32xf32>
    %154 = vector.shape_cast %151 : vector<8x32xf32> to vector<1x8x32xf32>
    tpu.vector_store %arg4[%c3_43, %c0_44, %c0_45], %154 {strides = array<i32>} : memref<8x8x32xf32, #tpu.memory_space<vmem>>, vector<1x8x32xf32>,
    %155 = vector.extract_strided_slice %150 {offsets = [0, 32], sizes = [8, 32], strides = [1, 1]} : vector<8x64xf32> to vector<8x32xf32>
    %c4 = arith.constant 4 : index
    %c0_46 = arith.constant 0 : index
    %c0_47 = arith.constant 0 : index
    %156 = vector.load %arg6[%c4, %c0_46, %c0_47] : memref<8x8x32xf32, #tpu.memory_space<vmem>>, vector<1x8x32xf32>
    %157 = vector.shape_cast %156 : vector<1x8x32xf32> to vector<8x32xf32>
    %158 = vector.shape_cast %155 : vector<8x32xf32> to vector<1x8x32xf32>
    tpu.vector_store %arg6[%c4, %c0_46, %c0_47], %158 {strides = array<i32>} : memref<8x8x32xf32, #tpu.memory_space<vmem>>, vector<1x8x32xf32>,
    %c4_48 = arith.constant 4 : index
    %c0_49 = arith.constant 0 : index
    %c0_50 = arith.constant 0 : index
    %159 = vector.load %arg1[%c4_48, %c0_49, %c0_50] : memref<8x8x192xf32, #tpu.memory_space<vmem>>, vector<1x8x192xf32>
    %160 = vector.shape_cast %159 : vector<1x8x192xf32> to vector<8x192xf32>
    %cst_51 = arith.constant dense<0.000000e+00> : vector<8x192xf32>
    %161 = tpu.matmul %150, %0, %cst_51 {dimension_numbers = #tpu.dot_dimension_numbers<[1], [0], [0], [1], [0, 0, 1, 1], [], []>} : vector<8x64xf32>, vector<64x192xf32>, vector<8x192xf32> -> vector<8x192xf32>
    %162 = vector.broadcast %1 : vector<1x192xf32> to vector<8x192xf32>
    %163 = arith.addf %161, %162 : vector<8x192xf32>
    %164 = vector.extract_strided_slice %160 {offsets = [0, 0], sizes = [8, 64], strides = [1, 1]} : vector<8x192xf32> to vector<8x64xf32>
    %165 = vector.extract_strided_slice %163 {offsets = [0, 0], sizes = [8, 64], strides = [1, 1]} : vector<8x192xf32> to vector<8x64xf32>
    %166 = arith.addf %164, %165 : vector<8x64xf32>
    %167 = arith.negf %166 : vector<8x64xf32>
    %168 = math.exp %167 : vector<8x64xf32>
    %cst_52 = arith.constant 1.000000e+00 : f32
    %169 = vector.broadcast %cst_52 : f32 to vector<8x64xf32>
    %170 = arith.addf %169, %168 : vector<8x64xf32>
    %171 = arith.divf %169, %170 : vector<8x64xf32>
    %172 = vector.extract_strided_slice %160 {offsets = [0, 64], sizes = [8, 64], strides = [1, 1]} : vector<8x192xf32> to vector<8x64xf32>
    %173 = vector.extract_strided_slice %163 {offsets = [0, 64], sizes = [8, 64], strides = [1, 1]} : vector<8x192xf32> to vector<8x64xf32>
    %174 = arith.addf %172, %173 : vector<8x64xf32>
    %175 = arith.negf %174 : vector<8x64xf32>
    %176 = math.exp %175 : vector<8x64xf32>
    %cst_53 = arith.constant 1.000000e+00 : f32
    %177 = vector.broadcast %cst_53 : f32 to vector<8x64xf32>
    %178 = arith.addf %177, %176 : vector<8x64xf32>
    %179 = arith.divf %177, %178 : vector<8x64xf32>
    %180 = vector.extract_strided_slice %160 {offsets = [0, 128], sizes = [8, 64], strides = [1, 1]} : vector<8x192xf32> to vector<8x64xf32>
    %181 = vector.extract_strided_slice %163 {offsets = [0, 128], sizes = [8, 64], strides = [1, 1]} : vector<8x192xf32> to vector<8x64xf32>
    %182 = arith.mulf %171, %181 : vector<8x64xf32>
    %183 = arith.addf %180, %182 : vector<8x64xf32>
    %184 = math.tanh %183 : vector<8x64xf32>
    %cst_54 = arith.constant 1.000000e+00 : f32
    %185 = vector.broadcast %cst_54 : f32 to vector<8x64xf32>
    %186 = arith.subf %185, %179 : vector<8x64xf32>
    %187 = arith.mulf %186, %184 : vector<8x64xf32>
    %188 = arith.mulf %179, %150 : vector<8x64xf32>
    %189 = arith.addf %187, %188 : vector<8x64xf32>
    %190 = vector.extract_strided_slice %189 {offsets = [0, 0], sizes = [8, 32], strides = [1, 1]} : vector<8x64xf32> to vector<8x32xf32>
    %c4_55 = arith.constant 4 : index
    %c0_56 = arith.constant 0 : index
    %c0_57 = arith.constant 0 : index
    %191 = vector.load %arg4[%c4_55, %c0_56, %c0_57] : memref<8x8x32xf32, #tpu.memory_space<vmem>>, vector<1x8x32xf32>
    %192 = vector.shape_cast %191 : vector<1x8x32xf32> to vector<8x32xf32>
    %193 = vector.shape_cast %190 : vector<8x32xf32> to vector<1x8x32xf32>
    tpu.vector_store %arg4[%c4_55, %c0_56, %c0_57], %193 {strides = array<i32>} : memref<8x8x32xf32, #tpu.memory_space<vmem>>, vector<1x8x32xf32>,
    %194 = vector.extract_strided_slice %189 {offsets = [0, 32], sizes = [8, 32], strides = [1, 1]} : vector<8x64xf32> to vector<8x32xf32>
    %c3_58 = arith.constant 3 : index
    %c0_59 = arith.constant 0 : index
    %c0_60 = arith.constant 0 : index
    %195 = vector.load %arg6[%c3_58, %c0_59, %c0_60] : memref<8x8x32xf32, #tpu.memory_space<vmem>>, vector<1x8x32xf32>
    %196 = vector.shape_cast %195 : vector<1x8x32xf32> to vector<8x32xf32>
    %197 = vector.shape_cast %194 : vector<8x32xf32> to vector<1x8x32xf32>
    tpu.vector_store %arg6[%c3_58, %c0_59, %c0_60], %197 {strides = array<i32>} : memref<8x8x32xf32, #tpu.memory_space<vmem>>, vector<1x8x32xf32>,
    %c5_61 = arith.constant 5 : index
    %c0_62 = arith.constant 0 : index
    %c0_63 = arith.constant 0 : index
    %198 = vector.load %arg1[%c5_61, %c0_62, %c0_63] : memref<8x8x192xf32, #tpu.memory_space<vmem>>, vector<1x8x192xf32>
    %199 = vector.shape_cast %198 : vector<1x8x192xf32> to vector<8x192xf32>
    %cst_64 = arith.constant dense<0.000000e+00> : vector<8x192xf32>
    %200 = tpu.matmul %189, %0, %cst_64 {dimension_numbers = #tpu.dot_dimension_numbers<[1], [0], [0], [1], [0, 0, 1, 1], [], []>} : vector<8x64xf32>, vector<64x192xf32>, vector<8x192xf32> -> vector<8x192xf32>
    %201 = vector.broadcast %1 : vector<1x192xf32> to vector<8x192xf32>
    %202 = arith.addf %200, %201 : vector<8x192xf32>
    %203 = vector.extract_strided_slice %199 {offsets = [0, 0], sizes = [8, 64], strides = [1, 1]} : vector<8x192xf32> to vector<8x64xf32>
    %204 = vector.extract_strided_slice %202 {offsets = [0, 0], sizes = [8, 64], strides = [1, 1]} : vector<8x192xf32> to vector<8x64xf32>
    %205 = arith.addf %203, %204 : vector<8x64xf32>
    %206 = arith.negf %205 : vector<8x64xf32>
    %207 = math.exp %206 : vector<8x64xf32>
    %cst_65 = arith.constant 1.000000e+00 : f32
    %208 = vector.broadcast %cst_65 : f32 to vector<8x64xf32>
    %209 = arith.addf %208, %207 : vector<8x64xf32>
    %210 = arith.divf %208, %209 : vector<8x64xf32>
    %211 = vector.extract_strided_slice %199 {offsets = [0, 64], sizes = [8, 64], strides = [1, 1]} : vector<8x192xf32> to vector<8x64xf32>
    %212 = vector.extract_strided_slice %202 {offsets = [0, 64], sizes = [8, 64], strides = [1, 1]} : vector<8x192xf32> to vector<8x64xf32>
    %213 = arith.addf %211, %212 : vector<8x64xf32>
    %214 = arith.negf %213 : vector<8x64xf32>
    %215 = math.exp %214 : vector<8x64xf32>
    %cst_66 = arith.constant 1.000000e+00 : f32
    %216 = vector.broadcast %cst_66 : f32 to vector<8x64xf32>
    %217 = arith.addf %216, %215 : vector<8x64xf32>
    %218 = arith.divf %216, %217 : vector<8x64xf32>
    %219 = vector.extract_strided_slice %199 {offsets = [0, 128], sizes = [8, 64], strides = [1, 1]} : vector<8x192xf32> to vector<8x64xf32>
    %220 = vector.extract_strided_slice %202 {offsets = [0, 128], sizes = [8, 64], strides = [1, 1]} : vector<8x192xf32> to vector<8x64xf32>
    %221 = arith.mulf %210, %220 : vector<8x64xf32>
    %222 = arith.addf %219, %221 : vector<8x64xf32>
    %223 = math.tanh %222 : vector<8x64xf32>
    %cst_67 = arith.constant 1.000000e+00 : f32
    %224 = vector.broadcast %cst_67 : f32 to vector<8x64xf32>
    %225 = arith.subf %224, %218 : vector<8x64xf32>
    %226 = arith.mulf %225, %223 : vector<8x64xf32>
    %227 = arith.mulf %218, %189 : vector<8x64xf32>
    %228 = arith.addf %226, %227 : vector<8x64xf32>
    %229 = vector.extract_strided_slice %228 {offsets = [0, 0], sizes = [8, 32], strides = [1, 1]} : vector<8x64xf32> to vector<8x32xf32>
    %c5_68 = arith.constant 5 : index
    %c0_69 = arith.constant 0 : index
    %c0_70 = arith.constant 0 : index
    %230 = vector.load %arg4[%c5_68, %c0_69, %c0_70] : memref<8x8x32xf32, #tpu.memory_space<vmem>>, vector<1x8x32xf32>
    %231 = vector.shape_cast %230 : vector<1x8x32xf32> to vector<8x32xf32>
    %232 = vector.shape_cast %229 : vector<8x32xf32> to vector<1x8x32xf32>
    tpu.vector_store %arg4[%c5_68, %c0_69, %c0_70], %232 {strides = array<i32>} : memref<8x8x32xf32, #tpu.memory_space<vmem>>, vector<1x8x32xf32>,
    %233 = vector.extract_strided_slice %228 {offsets = [0, 32], sizes = [8, 32], strides = [1, 1]} : vector<8x64xf32> to vector<8x32xf32>
    %c2_71 = arith.constant 2 : index
    %c0_72 = arith.constant 0 : index
    %c0_73 = arith.constant 0 : index
    %234 = vector.load %arg6[%c2_71, %c0_72, %c0_73] : memref<8x8x32xf32, #tpu.memory_space<vmem>>, vector<1x8x32xf32>
    %235 = vector.shape_cast %234 : vector<1x8x32xf32> to vector<8x32xf32>
    %236 = vector.shape_cast %233 : vector<8x32xf32> to vector<1x8x32xf32>
    tpu.vector_store %arg6[%c2_71, %c0_72, %c0_73], %236 {strides = array<i32>} : memref<8x8x32xf32, #tpu.memory_space<vmem>>, vector<1x8x32xf32>,
    %c6_74 = arith.constant 6 : index
    %c0_75 = arith.constant 0 : index
    %c0_76 = arith.constant 0 : index
    %237 = vector.load %arg1[%c6_74, %c0_75, %c0_76] : memref<8x8x192xf32, #tpu.memory_space<vmem>>, vector<1x8x192xf32>
    %238 = vector.shape_cast %237 : vector<1x8x192xf32> to vector<8x192xf32>
    %cst_77 = arith.constant dense<0.000000e+00> : vector<8x192xf32>
    %239 = tpu.matmul %228, %0, %cst_77 {dimension_numbers = #tpu.dot_dimension_numbers<[1], [0], [0], [1], [0, 0, 1, 1], [], []>} : vector<8x64xf32>, vector<64x192xf32>, vector<8x192xf32> -> vector<8x192xf32>
    %240 = vector.broadcast %1 : vector<1x192xf32> to vector<8x192xf32>
    %241 = arith.addf %239, %240 : vector<8x192xf32>
    %242 = vector.extract_strided_slice %238 {offsets = [0, 0], sizes = [8, 64], strides = [1, 1]} : vector<8x192xf32> to vector<8x64xf32>
    %243 = vector.extract_strided_slice %241 {offsets = [0, 0], sizes = [8, 64], strides = [1, 1]} : vector<8x192xf32> to vector<8x64xf32>
    %244 = arith.addf %242, %243 : vector<8x64xf32>
    %245 = arith.negf %244 : vector<8x64xf32>
    %246 = math.exp %245 : vector<8x64xf32>
    %cst_78 = arith.constant 1.000000e+00 : f32
    %247 = vector.broadcast %cst_78 : f32 to vector<8x64xf32>
    %248 = arith.addf %247, %246 : vector<8x64xf32>
    %249 = arith.divf %247, %248 : vector<8x64xf32>
    %250 = vector.extract_strided_slice %238 {offsets = [0, 64], sizes = [8, 64], strides = [1, 1]} : vector<8x192xf32> to vector<8x64xf32>
    %251 = vector.extract_strided_slice %241 {offsets = [0, 64], sizes = [8, 64], strides = [1, 1]} : vector<8x192xf32> to vector<8x64xf32>
    %252 = arith.addf %250, %251 : vector<8x64xf32>
    %253 = arith.negf %252 : vector<8x64xf32>
    %254 = math.exp %253 : vector<8x64xf32>
    %cst_79 = arith.constant 1.000000e+00 : f32
    %255 = vector.broadcast %cst_79 : f32 to vector<8x64xf32>
    %256 = arith.addf %255, %254 : vector<8x64xf32>
    %257 = arith.divf %255, %256 : vector<8x64xf32>
    %258 = vector.extract_strided_slice %238 {offsets = [0, 128], sizes = [8, 64], strides = [1, 1]} : vector<8x192xf32> to vector<8x64xf32>
    %259 = vector.extract_strided_slice %241 {offsets = [0, 128], sizes = [8, 64], strides = [1, 1]} : vector<8x192xf32> to vector<8x64xf32>
    %260 = arith.mulf %249, %259 : vector<8x64xf32>
    %261 = arith.addf %258, %260 : vector<8x64xf32>
    %262 = math.tanh %261 : vector<8x64xf32>
    %cst_80 = arith.constant 1.000000e+00 : f32
    %263 = vector.broadcast %cst_80 : f32 to vector<8x64xf32>
    %264 = arith.subf %263, %257 : vector<8x64xf32>
    %265 = arith.mulf %264, %262 : vector<8x64xf32>
    %266 = arith.mulf %257, %228 : vector<8x64xf32>
    %267 = arith.addf %265, %266 : vector<8x64xf32>
    %268 = vector.extract_strided_slice %267 {offsets = [0, 0], sizes = [8, 32], strides = [1, 1]} : vector<8x64xf32> to vector<8x32xf32>
    %c6_81 = arith.constant 6 : index
    %c0_82 = arith.constant 0 : index
    %c0_83 = arith.constant 0 : index
    %269 = vector.load %arg4[%c6_81, %c0_82, %c0_83] : memref<8x8x32xf32, #tpu.memory_space<vmem>>, vector<1x8x32xf32>
    %270 = vector.shape_cast %269 : vector<1x8x32xf32> to vector<8x32xf32>
    %271 = vector.shape_cast %268 : vector<8x32xf32> to vector<1x8x32xf32>
    tpu.vector_store %arg4[%c6_81, %c0_82, %c0_83], %271 {strides = array<i32>} : memref<8x8x32xf32, #tpu.memory_space<vmem>>, vector<1x8x32xf32>,
    %272 = vector.extract_strided_slice %267 {offsets = [0, 32], sizes = [8, 32], strides = [1, 1]} : vector<8x64xf32> to vector<8x32xf32>
    %c1_84 = arith.constant 1 : index
    %c0_85 = arith.constant 0 : index
    %c0_86 = arith.constant 0 : index
    %273 = vector.load %arg6[%c1_84, %c0_85, %c0_86] : memref<8x8x32xf32, #tpu.memory_space<vmem>>, vector<1x8x32xf32>
    %274 = vector.shape_cast %273 : vector<1x8x32xf32> to vector<8x32xf32>
    %275 = vector.shape_cast %272 : vector<8x32xf32> to vector<1x8x32xf32>
    tpu.vector_store %arg6[%c1_84, %c0_85, %c0_86], %275 {strides = array<i32>} : memref<8x8x32xf32, #tpu.memory_space<vmem>>, vector<1x8x32xf32>,
    %c7_87 = arith.constant 7 : index
    %c0_88 = arith.constant 0 : index
    %c0_89 = arith.constant 0 : index
    %276 = vector.load %arg1[%c7_87, %c0_88, %c0_89] : memref<8x8x192xf32, #tpu.memory_space<vmem>>, vector<1x8x192xf32>
    %277 = vector.shape_cast %276 : vector<1x8x192xf32> to vector<8x192xf32>
    %cst_90 = arith.constant dense<0.000000e+00> : vector<8x192xf32>
    %278 = tpu.matmul %267, %0, %cst_90 {dimension_numbers = #tpu.dot_dimension_numbers<[1], [0], [0], [1], [0, 0, 1, 1], [], []>} : vector<8x64xf32>, vector<64x192xf32>, vector<8x192xf32> -> vector<8x192xf32>
    %279 = vector.broadcast %1 : vector<1x192xf32> to vector<8x192xf32>
    %280 = arith.addf %278, %279 : vector<8x192xf32>
    %281 = vector.extract_strided_slice %277 {offsets = [0, 0], sizes = [8, 64], strides = [1, 1]} : vector<8x192xf32> to vector<8x64xf32>
    %282 = vector.extract_strided_slice %280 {offsets = [0, 0], sizes = [8, 64], strides = [1, 1]} : vector<8x192xf32> to vector<8x64xf32>
    %283 = arith.addf %281, %282 : vector<8x64xf32>
    %284 = arith.negf %283 : vector<8x64xf32>
    %285 = math.exp %284 : vector<8x64xf32>
    %cst_91 = arith.constant 1.000000e+00 : f32
    %286 = vector.broadcast %cst_91 : f32 to vector<8x64xf32>
    %287 = arith.addf %286, %285 : vector<8x64xf32>
    %288 = arith.divf %286, %287 : vector<8x64xf32>
    %289 = vector.extract_strided_slice %277 {offsets = [0, 64], sizes = [8, 64], strides = [1, 1]} : vector<8x192xf32> to vector<8x64xf32>
    %290 = vector.extract_strided_slice %280 {offsets = [0, 64], sizes = [8, 64], strides = [1, 1]} : vector<8x192xf32> to vector<8x64xf32>
    %291 = arith.addf %289, %290 : vector<8x64xf32>
    %292 = arith.negf %291 : vector<8x64xf32>
    %293 = math.exp %292 : vector<8x64xf32>
    %cst_92 = arith.constant 1.000000e+00 : f32
    %294 = vector.broadcast %cst_92 : f32 to vector<8x64xf32>
    %295 = arith.addf %294, %293 : vector<8x64xf32>
    %296 = arith.divf %294, %295 : vector<8x64xf32>
    %297 = vector.extract_strided_slice %277 {offsets = [0, 128], sizes = [8, 64], strides = [1, 1]} : vector<8x192xf32> to vector<8x64xf32>
    %298 = vector.extract_strided_slice %280 {offsets = [0, 128], sizes = [8, 64], strides = [1, 1]} : vector<8x192xf32> to vector<8x64xf32>
    %299 = arith.mulf %288, %298 : vector<8x64xf32>
    %300 = arith.addf %297, %299 : vector<8x64xf32>
    %301 = math.tanh %300 : vector<8x64xf32>
    %cst_93 = arith.constant 1.000000e+00 : f32
    %302 = vector.broadcast %cst_93 : f32 to vector<8x64xf32>
    %303 = arith.subf %302, %296 : vector<8x64xf32>
    %304 = arith.mulf %303, %301 : vector<8x64xf32>
    %305 = arith.mulf %296, %267 : vector<8x64xf32>
    %306 = arith.addf %304, %305 : vector<8x64xf32>
    %307 = vector.extract_strided_slice %306 {offsets = [0, 0], sizes = [8, 32], strides = [1, 1]} : vector<8x64xf32> to vector<8x32xf32>
    %c7_94 = arith.constant 7 : index
    %c0_95 = arith.constant 0 : index
    %c0_96 = arith.constant 0 : index
    %308 = vector.load %arg4[%c7_94, %c0_95, %c0_96] : memref<8x8x32xf32, #tpu.memory_space<vmem>>, vector<1x8x32xf32>
    %309 = vector.shape_cast %308 : vector<1x8x32xf32> to vector<8x32xf32>
    %310 = vector.shape_cast %307 : vector<8x32xf32> to vector<1x8x32xf32>
    tpu.vector_store %arg4[%c7_94, %c0_95, %c0_96], %310 {strides = array<i32>} : memref<8x8x32xf32, #tpu.memory_space<vmem>>, vector<1x8x32xf32>,
    %311 = vector.extract_strided_slice %306 {offsets = [0, 32], sizes = [8, 32], strides = [1, 1]} : vector<8x64xf32> to vector<8x32xf32>
    %c0_97 = arith.constant 0 : index
    %c0_98 = arith.constant 0 : index
    %c0_99 = arith.constant 0 : index
    %312 = vector.load %arg6[%c0_97, %c0_98, %c0_99] : memref<8x8x32xf32, #tpu.memory_space<vmem>>, vector<1x8x32xf32>
    %313 = vector.shape_cast %312 : vector<1x8x32xf32> to vector<8x32xf32>
    %314 = vector.shape_cast %311 : vector<8x32xf32> to vector<1x8x32xf32>
    tpu.vector_store %arg6[%c0_97, %c0_98, %c0_99], %314 {strides = array<i32>} : memref<8x8x32xf32, #tpu.memory_space<vmem>>, vector<1x8x32xf32>,
    %c0_100 = arith.constant 0 : index
    %c0_101 = arith.constant 0 : index
    %c0_102 = arith.constant 0 : index
    %315 = vector.load %arg4[%c0_100, %c0_101, %c0_102] : memref<8x8x32xf32, #tpu.memory_space<vmem>>, vector<8x8x32xf32>
    %c0_103 = arith.constant 0 : index
    %c0_104 = arith.constant 0 : index
    %c0_105 = arith.constant 0 : index
    %316 = vector.load %arg6[%c0_103, %c0_104, %c0_105] : memref<8x8x32xf32, #tpu.memory_space<vmem>>, vector<8x8x32xf32>
    %317 = arith.addf %315, %316 : vector<8x8x32xf32>
    %c0_106 = arith.constant 0 : index
    %c0_107 = arith.constant 0 : index
    %c0_108 = arith.constant 0 : index
    %318 = vector.load %arg4[%c0_106, %c0_107, %c0_108] : memref<8x8x32xf32, #tpu.memory_space<vmem>>, vector<8x8x32xf32>
    tpu.vector_store %arg4[%c0_106, %c0_107, %c0_108], %317 {strides = array<i32>} : memref<8x8x32xf32, #tpu.memory_space<vmem>>, vector<8x8x32xf32>,
    %319 = vector.extract_strided_slice %306 {offsets = [0, 0], sizes = [8, 32], strides = [1, 1]} : vector<8x64xf32> to vector<8x32xf32>
    %c0_109 = arith.constant 0 : index
    %c0_110 = arith.constant 0 : index
    %c0_111 = arith.constant 0 : index
    %320 = vector.load %arg5[%c0_109, %c0_110, %c0_111] : memref<2x8x32xf32, #tpu.memory_space<vmem>>, vector<1x8x32xf32>
    %321 = vector.shape_cast %320 : vector<1x8x32xf32> to vector<8x32xf32>
    %322 = vector.shape_cast %319 : vector<8x32xf32> to vector<1x8x32xf32>
    tpu.vector_store %arg5[%c0_109, %c0_110, %c0_111], %322 {strides = array<i32>} : memref<2x8x32xf32, #tpu.memory_space<vmem>>, vector<1x8x32xf32>,
    %323 = vector.extract_strided_slice %306 {offsets = [0, 32], sizes = [8, 32], strides = [1, 1]} : vector<8x64xf32> to vector<8x32xf32>
    %c1_112 = arith.constant 1 : index
    %c0_113 = arith.constant 0 : index
    %c0_114 = arith.constant 0 : index
    %324 = vector.load %arg5[%c1_112, %c0_113, %c0_114] : memref<2x8x32xf32, #tpu.memory_space<vmem>>, vector<1x8x32xf32>
    %325 = vector.shape_cast %324 : vector<1x8x32xf32> to vector<8x32xf32>
    %326 = vector.shape_cast %323 : vector<8x32xf32> to vector<1x8x32xf32>
    tpu.vector_store %arg5[%c1_112, %c0_113, %c0_114], %326 {strides = array<i32>} : memref<2x8x32xf32, #tpu.memory_space<vmem>>, vector<1x8x32xf32>,
    return
  }
  func.func @transform_0(%arg0: i32) -> (i32, i32, i32) {
    %c0_i32 = arith.constant 0 : i32
    %c0_i32_0 = arith.constant 0 : i32
    %c0_i32_1 = arith.constant 0 : i32
    %c0_i32_2 = arith.constant 0 : i32
    return %c0_i32, %c0_i32_0, %c0_i32_1 : i32, i32, i32
  }
  func.func @transform_1(%arg0: i32) -> (i32, i32) {
    %c0_i32 = arith.constant 0 : i32
    %c0_i32_0 = arith.constant 0 : i32
    %c0_i32_1 = arith.constant 0 : i32
    return %c0_i32, %c0_i32_0 : i32, i32
  }
  func.func @transform_2(%arg0: i32) -> (i32, i32) {
    %c0_i32 = arith.constant 0 : i32
    %c0_i32_0 = arith.constant 0 : i32
    %c0_i32_1 = arith.constant 0 : i32
    return %c0_i32, %c0_i32_0 : i32, i32
  }
  func.func @transform_3(%arg0: i32) -> (i32, i32, i32) {
    %c0_i32 = arith.constant 0 : i32
    %c0_i32_0 = arith.constant 0 : i32
    %c0_i32_1 = arith.constant 0 : i32
    %c0_i32_2 = arith.constant 0 : i32
    return %c0_i32, %c0_i32_0, %c0_i32_1 : i32, i32, i32
  }
  func.func @transform_4(%arg0: i32) -> (i32, i32, i32) {
    %c0_i32 = arith.constant 0 : i32
    %c0_i32_0 = arith.constant 0 : i32
    %c0_i32_1 = arith.constant 0 : i32
    %c0_i32_2 = arith.constant 0 : i32
    return %c0_i32, %c0_i32_0, %c0_i32_1 : i32, i32, i32
  }
}

</mosaic_0001>

<bundles_post_ra>
// kernel: squeeze.8
= control target key start
LH: loop header
LB: loop body
LE: loop exit
PB: predicated region body
PF: predicated region fallthrough
CT: control target
= control target key end

     0   :  { %s331_s10 = smov 96   ;;  %s332_s11 = smov 64   ;;  %vm3_vm0 = vcmask 261120   ;;  %s475_s0 = inlined_call_operand.vmem [shape: f32[1,32,96], index: 0, kind: input, shape index: {}]   ;;  %s476_s1 = inlined_call_operand.vmem [shape: f32[32,3,32], index: 1, kind: output, shape index: {}]  }
   0x1   :  { %v293_v0 = vld [vmem:[%s475_s0 + $0x10] sm:$0xff]   ;;  %v27_v1 = vld [vmem:[%s475_s0] sm:$0xff]   ;;  %v294_v2 = vld [vmem:[%s475_s0 + $0x18] sm:$0xff]  }
   0x2   :  { %46 = vrot.lane.b32.xlu1 %v293_v0, %s331_s10  ;;  %28 = vrot.lane.b32.xlu0 %v27_v1, %s331_s10  ;;  %v292_v3 = vld [vmem:[%s475_s0 + $0x8] sm:$0xff]   ;;  %4 = vst.msk [vmem:[#allocation0] ss:$8 sm:$0xf] %vm3_vm0, %v27_v1  }
   0x3   :  { %63 = vrot.lane.b32.xlu2 %v27_v1, %s332_s11  ;;  %5 = vst.msk [vmem:[#allocation0] ss:$8 sm:$0xf0] %vm3_vm0, %v27_v1  }
   0x4   :  { %10 = vst.msk [vmem:[#allocation0 + $0x40] ss:$8 sm:$0xf] %vm3_vm0, %v292_v3  }
   0x5   :  { %12 = vst.msk [vmem:[#allocation0 + $0x40] ss:$8 sm:$0xf0] %vm3_vm0, %v292_v3  }
   0x6   :  { %24 = vst.msk [vmem:[#allocation0 + $0xc0] ss:$8 sm:$0xf] %vm3_vm0, %v294_v2  }
   0x7   :  { %26 = vst.msk [vmem:[#allocation0 + $0xc0] ss:$8 sm:$0xf0] %vm3_vm0, %v294_v2  }
   0x8   :  { %17 = vst.msk [vmem:[#allocation0 + $0x80] ss:$8 sm:$0xf] %vm3_vm0, %v293_v0  }
   0x9   :  { %19 = vst.msk [vmem:[#allocation0 + $0x80] ss:$8 sm:$0xf0] %vm3_vm0, %v293_v0  }
   0xa   :  { %55 = vrot.lane.b32.xlu1 %v294_v2, %s331_s10  ;;  %37 = vrot.lane.b32.xlu0 %v292_v3, %s331_s10 }
   0xb   :  { %72 = vrot.lane.b32.xlu2 %v292_v3, %s332_s11 }
  0x12   :  { %90 = vrot.lane.b32.xlu1 %v294_v2, %s332_s11  ;;  %81 = vrot.lane.b32.xlu0 %v293_v0, %s332_s11 }
  0x5d   :  { %v64_v4 = vpop.permute.xlu2 %63  }
  0x5e   :  { %67 = vst.msk [vmem:[#allocation0 + $0x2] ss:$8 sm:$0xf] %vm3_vm0, %v64_v4  }
  0x5f   :  { %69 = vst.msk [vmem:[#allocation0 + $0x2] ss:$8 sm:$0xf0] %vm3_vm0, %v64_v4  }
  0x65   :  { %v73_v5 = vpop.permute.xlu2 %72  }
  0x66   :  { %76 = vst.msk [vmem:[#allocation0 + $0x42] ss:$8 sm:$0xf] %vm3_vm0, %v73_v5  }
  0x67   :  { %78 = vst.msk [vmem:[#allocation0 + $0x42] ss:$8 sm:$0xf0] %vm3_vm0, %v73_v5  }
  0x74   :  { %v47_v6 = vpop.permute.xlu1 %46   ;;  %v29_v7 = vpop.permute.xlu0 %28  }
  0x75   :  { %50 = vst.msk [vmem:[#allocation0 + $0x81] ss:$8 sm:$0xf] %vm3_vm0, %v47_v6  }
  0x76   :  { %52 = vst.msk [vmem:[#allocation0 + $0x81] ss:$8 sm:$0xf0] %vm3_vm0, %v47_v6  }
  0x77   :  { %32 = vst.msk [vmem:[#allocation0 + $0x1] ss:$8 sm:$0xf] %vm3_vm0, %v29_v7  }
  0x78   :  { %34 = vst.msk [vmem:[#allocation0 + $0x1] ss:$8 sm:$0xf0] %vm3_vm0, %v29_v7  }
  0x7c   :  { %v56_v8 = vpop.permute.xlu1 %55   ;;  %v38_v9 = vpop.permute.xlu0 %37  }
  0x7d   :  { %59 = vst.msk [vmem:[#allocation0 + $0xc1] ss:$8 sm:$0xf] %vm3_vm0, %v56_v8  }
  0x7e   :  { %v99_v14 = vld [vmem:[#allocation0] sm:$0xf]  ;;  %v104_v15 = vld [vmem:[#allocation0 + $0x8] sm:$0xf]  ;;  %v110_v16 = vld [vmem:[#allocation0 + $0x10] sm:$0xf] }
  0x7f   :  { %v122_v10 = vld [vmem:[#allocation0 + $0x20] sm:$0xf]  ;;  %v128_v11 = vld [vmem:[#allocation0 + $0x28] sm:$0xf]  ;;  %v134_v12 = vld [vmem:[#allocation0 + $0x30] sm:$0xf] }
  0x80   :  { %301 = vst [vmem:[%s476_s1 + $0x10] sm:$0xf] %v122_v10  ;;  %v140_v13 = vld [vmem:[#allocation0 + $0x38] sm:$0xf] }
  0x81   :  { %302 = vst [vmem:[%s476_s1 + $0x14] sm:$0xf] %v128_v11  ;;  %v116_v17 = vld [vmem:[#allocation0 + $0x18] sm:$0xf] }
  0x82   :  { %303 = vst [vmem:[%s476_s1 + $0x18] sm:$0xf] %v134_v12 }
  0x83   :  { %304 = vst [vmem:[%s476_s1 + $0x1c] sm:$0xf] %v140_v13 }
  0x84   :  { %102 = vst [vmem:[%s476_s1] sm:$0xf] %v99_v14  ;;  %v91_v18 = vpop.permute.xlu1 %90   ;;  %v82_v19 = vpop.permute.xlu0 %81  }
  0x85   :  { %298 = vst [vmem:[%s476_s1 + $0x4] sm:$0xf] %v104_v15 }
  0x86   :  { %299 = vst [vmem:[%s476_s1 + $0x8] sm:$0xf] %v110_v16 }
  0x87   :  { %300 = vst [vmem:[%s476_s1 + $0xc] sm:$0xf] %v116_v17 }
  0x88   :  { %61 = vst.msk [vmem:[#allocation0 + $0xc1] ss:$8 sm:$0xf0] %vm3_vm0, %v56_v8  }
  0x89   :  { %41 = vst.msk [vmem:[#allocation0 + $0x41] ss:$8 sm:$0xf] %vm3_vm0, %v38_v9  }
  0x8a   :  { %43 = vst.msk [vmem:[#allocation0 + $0x41] ss:$8 sm:$0xf0] %vm3_vm0, %v38_v9  }
  0x8b   :  { %94 = vst.msk [vmem:[#allocation0 + $0xc2] ss:$8 sm:$0xf] %vm3_vm0, %v91_v18  }
  0x8c   :  { %96 = vst.msk [vmem:[#allocation0 + $0xc2] ss:$8 sm:$0xf0] %vm3_vm0, %v91_v18  }
  0x8d   :  { %85 = vst.msk [vmem:[#allocation0 + $0x82] ss:$8 sm:$0xf] %vm3_vm0, %v82_v19  }
  0x8e   :  { %87 = vst.msk [vmem:[#allocation0 + $0x82] ss:$8 sm:$0xf0] %vm3_vm0, %v82_v19  }
  0x90   :  { %v146_v28 = vld [vmem:[#allocation0 + $0x40] sm:$0xf]  ;;  %v152_v29 = vld [vmem:[#allocation0 + $0x48] sm:$0xf]  ;;  %v158_v30 = vld [vmem:[#allocation0 + $0x50] sm:$0xf] }
  0x91   :  { %v164_v31 = vld [vmem:[#allocation0 + $0x58] sm:$0xf]  ;;  %305 = vst [vmem:[%s476_s1 + $0x20] sm:$0xf] %v146_v28  ;;  %v170_v32 = vld [vmem:[#allocation0 + $0x60] sm:$0xf] }
  0x92   :  { %v242_v20 = vld [vmem:[#allocation0 + $0xc0] sm:$0xf]  ;;  %v248_v21 = vld [vmem:[#allocation0 + $0xc8] sm:$0xf]  ;;  %v254_v22 = vld [vmem:[#allocation0 + $0xd0] sm:$0xf] }
  0x93   :  { %321 = vst [vmem:[%s476_s1 + $0x60] sm:$0xf] %v242_v20  ;;  %v260_v23 = vld [vmem:[#allocation0 + $0xd8] sm:$0xf]  ;;  %v266_v24 = vld [vmem:[#allocation0 + $0xe0] sm:$0xf] }
  0x94   :  { %322 = vst [vmem:[%s476_s1 + $0x64] sm:$0xf] %v248_v21  ;;  %v272_v25 = vld [vmem:[#allocation0 + $0xe8] sm:$0xf]  ;;  %v278_v26 = vld [vmem:[#allocation0 + $0xf0] sm:$0xf] }
  0x95   :  { %323 = vst [vmem:[%s476_s1 + $0x68] sm:$0xf] %v254_v22  ;;  %v284_v27 = vld [vmem:[#allocation0 + $0xf8] sm:$0xf]  ;;  %v176_v33 = vld [vmem:[#allocation0 + $0x68] sm:$0xf] }
  0x96   :  { %324 = vst [vmem:[%s476_s1 + $0x6c] sm:$0xf] %v260_v23  ;;  %v182_v34 = vld [vmem:[#allocation0 + $0x70] sm:$0xf]  ;;  %v188_v35 = vld [vmem:[#allocation0 + $0x78] sm:$0xf] }
  0x97   :  { %325 = vst [vmem:[%s476_s1 + $0x70] sm:$0xf] %v266_v24  ;;  %v194_v36 = vld [vmem:[#allocation0 + $0x80] sm:$0xf]  ;;  %v200_v37 = vld [vmem:[#allocation0 + $0x88] sm:$0xf] }
  0x98   :  { %326 = vst [vmem:[%s476_s1 + $0x74] sm:$0xf] %v272_v25  ;;  %v206_v38 = vld [vmem:[#allocation0 + $0x90] sm:$0xf]  ;;  %v212_v39 = vld [vmem:[#allocation0 + $0x98] sm:$0xf] }
  0x99   :  { %327 = vst [vmem:[%s476_s1 + $0x78] sm:$0xf] %v278_v26  ;;  %v218_v40 = vld [vmem:[#allocation0 + $0xa0] sm:$0xf]  ;;  %v224_v41 = vld [vmem:[#allocation0 + $0xa8] sm:$0xf] }
  0x9a   :  { %328 = vst [vmem:[%s476_s1 + $0x7c] sm:$0xf] %v284_v27  ;;  %v230_v42 = vld [vmem:[#allocation0 + $0xb0] sm:$0xf]  ;;  %v236_v43 = vld [vmem:[#allocation0 + $0xb8] sm:$0xf] }
  0x9b   :  { %306 = vst [vmem:[%s476_s1 + $0x24] sm:$0xf] %v152_v29 }
  0x9c   :  { %307 = vst [vmem:[%s476_s1 + $0x28] sm:$0xf] %v158_v30 }
  0x9d   :  { %308 = vst [vmem:[%s476_s1 + $0x2c] sm:$0xf] %v164_v31 }
  0x9e   :  { %309 = vst [vmem:[%s476_s1 + $0x30] sm:$0xf] %v170_v32 }
  0x9f   :  { %310 = vst [vmem:[%s476_s1 + $0x34] sm:$0xf] %v176_v33 }
  0xa0   :  { %311 = vst [vmem:[%s476_s1 + $0x38] sm:$0xf] %v182_v34 }
  0xa1   :  { %312 = vst [vmem:[%s476_s1 + $0x3c] sm:$0xf] %v188_v35 }
  0xa2   :  { %313 = vst [vmem:[%s476_s1 + $0x40] sm:$0xf] %v194_v36 }
  0xa3   :  { %314 = vst [vmem:[%s476_s1 + $0x44] sm:$0xf] %v200_v37 }
  0xa4   :  { %315 = vst [vmem:[%s476_s1 + $0x48] sm:$0xf] %v206_v38 }
  0xa5   :  { %316 = vst [vmem:[%s476_s1 + $0x4c] sm:$0xf] %v212_v39 }
  0xa6   :  { %317 = vst [vmem:[%s476_s1 + $0x50] sm:$0xf] %v218_v40 }
  0xa7   :  { %318 = vst [vmem:[%s476_s1 + $0x54] sm:$0xf] %v224_v41 }
  0xa8   :  { %319 = vst [vmem:[%s476_s1 + $0x58] sm:$0xf] %v230_v42 }
  0xa9   :  { %320 = vst [vmem:[%s476_s1 + $0x5c] sm:$0xf] %v236_v43 }

// kernel: squeeze.10
= control target key start
LH: loop header
LB: loop body
LE: loop exit
PB: predicated region body
PF: predicated region fallthrough
CT: control target
= control target key end

     0   :  { %s30_s8 = smov 64   ;;  %vm7_vm0 = vcmask 261120   ;;  %s47_s0 = inlined_call_operand.vmem [shape: f32[96], index: 0, kind: input, shape index: {}]   ;;  %s48_s1 = inlined_call_operand.vmem [shape: f32[1,3,32], index: 1, kind: output, shape index: {}]  }
   0x1   :  { %v4_v0 = vld [vmem:[%s47_s0] sm:$0x1]  ;;  %s29_s0 = smov 96  }
   0x2   :  { %5 = vst [vmem:[#allocation1] sm:$0x1] %v4_v0 }
   0x9   :  { %v9_v1 = vld [vmem:[#allocation1] sm:$0x1]  }
   0xa   :  { %10 = vrot.lane.b32.xlu0 %v9_v1, %s29_s0  ;;  %v15_v2 = vld [vmem:[#allocation1] sm:$0x1]  }
   0xb   :  { %v6_v3 = vld [vmem:[#allocation1] sm:$0x1]  }
   0xc   :  { %8 = vst.msk [vmem:[#allocation0] sm:$0x1] %vm7_vm0, %v6_v3  }
  0x12   :  { %16 = vrot.lane.b32.xlu0 %v15_v2, %s30_s8 }
  0x7c   :  { %v11_v4 = vpop.permute.xlu0 %10  }
  0x7d   :  { %14 = vst.msk [vmem:[#allocation0 + $0x1] sm:$0x1] %vm7_vm0, %v11_v4  }
  0x84   :  { %v17_v5 = vpop.permute.xlu0 %16  }
  0x85   :  { %20 = vst.msk [vmem:[#allocation0 + $0x2] sm:$0x1] %vm7_vm0, %v17_v5  }
  0x8c   :  { %v23_v6 = vld [vmem:[#allocation0] sm:$0xf] }
  0x8d   :  { %26 = vst [vmem:[%s48_s1] sm:$0xf] %v23_v6 }

// kernel: encoder_attention_forward.1
= control target key start
LH: loop header
LB: loop body
LE: loop exit
PB: predicated region body
PF: predicated region fallthrough
CT: control target
= control target key end

     0   :  { %10 = vsyncpa [#allocation4], 0  ;;  %s1366_s0 = inlined_call_operand.vmem [shape: f32[8,8,192], index: 0, kind: input, shape index: {}]   ;;  %s1367_s1 = inlined_call_operand.vmem [shape: f32[64,192], index: 1, kind: input, shape index: {}]   ;;  %s1368_s2 = inlined_call_operand.vmem [shape: f32[1,192], index: 2, kind: input, shape index: {}]   ;;  %s1369_s3 = inlined_call_operand.hbm [shape: f32[8,8,32], index: 3, kind: output, shape index: {0}]   ;;  %s1370_s4 = inlined_call_operand.hbm [shape: f32[2,8,32], index: 4, kind: output, shape index: {1}]  }
   0x1   :  { %v985_v0 = vld [vmem:[%s1367_s1 + $0x70] sm:$0xff]  ;;  %v990_v1 = vld [vmem:[%s1367_s1 + $0x60] sm:$0xff]  ;;  %v1002_v3 = vld [vmem:[%s1367_s1 + $0x78] sm:$0xff] }
   0x2   :  { %54 = vmatpush.msra.mxu0 %v985_v0  ;;  %141 = vmatpush.msra.mxu2 %v985_v0  ;;  %v997_v2 = vld [vmem:[%s1367_s1 + $0x50] sm:$0xff]  ;;  %v1009_v4 = vld [vmem:[%s1367_s1 + $0x68] sm:$0xff]  ;;  %v1014_v5 = vld [vmem:[%s1367_s1 + $0x40] sm:$0xff] }
   0x3   :  { %74 = vmatpush.msra.mxu1 %v1002_v3  ;;  %v1019_v6 = vld [vmem:[%s1367_s1 + $0x58] sm:$0xff]  ;;  %161 = vmatpush.msra.mxu3 %v1002_v3  ;;  %v1028_v7 = vld [vmem:[%s1367_s1 + $0x30] sm:$0xff]  ;;  %v1033_v8 = vld [vmem:[%s1367_s1 + $0x48] sm:$0xff] }
   0x4   :  { %55 = vmatpush.msra.mxu0 %v990_v1  ;;  %142 = vmatpush.msra.mxu2 %v990_v1 }
   0x5   :  { %75 = vmatpush.msra.mxu1 %v1009_v4  ;;  %162 = vmatpush.msra.mxu3 %v1009_v4 }
   0x6   :  { %56 = vmatpush.msra.mxu0 %v997_v2  ;;  %143 = vmatpush.msra.mxu2 %v997_v2 }
   0x7   :  { %11 = vsyncpa [#allocation6], 0  ;;  %76 = vmatpush.msra.mxu1 %v1019_v6  ;;  %v1042_v9 = vld [vmem:[%s1367_s1 + $0x20] sm:$0xff]  ;;  %v1047_v10 = vld [vmem:[%s1367_s1 + $0x38] sm:$0xff]  ;;  %163 = vmatpush.msra.mxu3 %v1019_v6  ;;  %v950_v16 = vmov 0.0   ;;  %s951_s25 = smov 64  }
   0x8   :  { %57 = vmatpush.msra.mxu0 %v1014_v5  ;;  %144 = vmatpush.msra.mxu2 %v1014_v5  ;;  %v1056_v11 = vld [vmem:[%s1367_s1 + $0x10] sm:$0xff]  ;;  %v1061_v12 = vld [vmem:[%s1367_s1 + $0x28] sm:$0xff]  ;;  %v1070_v13 = vld [vmem:[%s1367_s1] sm:$0xff]  ;;  %vm121_vm4 = vcmask 261120   ;;  %vm42_vm5 = vcmask 523264   ;;  %s952_s23 = smov 32  }
   0x9   :  { %77 = vmatpush.msra.mxu1 %v1033_v8  ;;  %164 = vmatpush.msra.mxu3 %v1033_v8  ;;  %v1075_v14 = vld [vmem:[%s1367_s1 + $0x18] sm:$0xff]  ;;  %v1084_v15 = vld [vmem:[%s1367_s1 + $0x8] sm:$0xff]  ;;  %v34_v17 = vld [vmem:[%s1368_s2] sm:$0x3]  ;;  %s790_s30 = sshll.u32 %s1370_s4, 4  ;;  %s954_s5 = smov 128   ;;  %s791_s30 = int_to_ptr.hbm [resolvable:$true] %s790_s30 }
   0xa   :  { %58 = vmatpush.msra.mxu0 %v1028_v7  ;;  %145 = vmatpush.msra.mxu2 %v1028_v7  ;;  %v1145_v18 = vperm.slane %v34_v17, 0  ;;  %v35_v19 = vld [vmem:[%s1366_s0] sm:$0xff]  ;;  %v1151_v28 = vperm.slane %v34_v17, 1  ;;  %v36_v38 = vld [vmem:[%s1366_s0 + $0x8] sm:$0xff]  ;;  %v808_v49 = vld [vmem:[%s1366_s0 + $0x10] sm:$0xff]  ;;  %s955_s6 = smov 8  }
   0xb   :  { %78 = vmatpush.msra.mxu1 %v1047_v10  ;;  %165 = vmatpush.msra.mxu3 %v1047_v10  ;;  %s956_s7 = smov [#allocation3]   ;;  %s777_s11 = sshll.u32 %s1369_s3, 4  ;;  %s778_s11 = int_to_ptr.hbm [resolvable:$true] %s777_s11 }
   0xc   :  { %59 = vmatpush.msra.mxu0 %v1042_v9  ;;  %146 = vmatpush.msra.mxu2 %v1042_v9  ;;  %s775_s8 = sshll.u32 %s956_s7, 4  ;;  %s776_s8 = int_to_ptr.vmem [resolvable:$true] %s775_s8 }
   0xd   :  { %79 = vmatpush.msra.mxu1 %v1061_v12  ;;  %166 = vmatpush.msra.mxu3 %v1061_v12 }
   0xe   :  { %60 = vmatpush.msra.mxu0 %v1056_v11  ;;  %147 = vmatpush.msra.mxu2 %v1056_v11 }
   0xf   :  { %80 = vmatpush.msra.mxu1 %v1075_v14  ;;  %167 = vmatpush.msra.mxu3 %v1075_v14 }
  0x10   :  { %61 = vmatpush.msra.mxu0 %v1070_v13  ;;  %148 = vmatpush.msra.mxu2 %v1070_v13 }
  0x11   :  { %62 = vmatmul.f32.vlgmr.msra.gmra.mxu0 %v950_v16  ;;  %81 = vmatpush.msra.mxu1 %v1084_v15 }
  0x12   :  { %82 = vmatmul.f32.vlgmr.msra.gmra.mxu1 %v950_v16  ;;  %168 = vmatpush.msra.mxu3 %v1084_v15 }
  0x13   :  { %228 = vmatpush.msrb.mxu0 %v985_v0  ;;  %248 = vmatpush.msrb.mxu1 %v1002_v3 }
  0x14   :  { %315 = vmatpush.msrb.mxu2 %v985_v0  ;;  %335 = vmatpush.msrb.mxu3 %v1002_v3 }
  0x15   :  { %229 = vmatpush.msrb.mxu0 %v990_v1  ;;  %249 = vmatpush.msrb.mxu1 %v1009_v4 }
  0x16   :  { %316 = vmatpush.msrb.mxu2 %v990_v1  ;;  %336 = vmatpush.msrb.mxu3 %v1009_v4 }
  0x17   :  { %230 = vmatpush.msrb.mxu0 %v997_v2  ;;  %250 = vmatpush.msrb.mxu1 %v1019_v6 }
  0x18   :  { %317 = vmatpush.msrb.mxu2 %v997_v2  ;;  %337 = vmatpush.msrb.mxu3 %v1019_v6 }
  0x19   :  { %231 = vmatpush.msrb.mxu0 %v1014_v5  ;;  %251 = vmatpush.msrb.mxu1 %v1033_v8 }
  0x1a   :  { %318 = vmatpush.msrb.mxu2 %v1014_v5  ;;  %338 = vmatpush.msrb.mxu3 %v1033_v8 }
  0x1b   :  { %232 = vmatpush.msrb.mxu0 %v1028_v7  ;;  %252 = vmatpush.msrb.mxu1 %v1047_v10 }
  0x1c   :  { %319 = vmatpush.msrb.mxu2 %v1028_v7  ;;  %339 = vmatpush.msrb.mxu3 %v1047_v10 }
  0x1d   :  { %233 = vmatpush.msrb.mxu0 %v1042_v9  ;;  %253 = vmatpush.msrb.mxu1 %v1061_v12 }
  0x1e   :  { %320 = vmatpush.msrb.mxu2 %v1042_v9  ;;  %340 = vmatpush.msrb.mxu3 %v1061_v12 }
  0x1f   :  { %234 = vmatpush.msrb.mxu0 %v1056_v11  ;;  %254 = vmatpush.msrb.mxu1 %v1075_v14 }
  0x20   :  { %321 = vmatpush.msrb.mxu2 %v1056_v11  ;;  %341 = vmatpush.msrb.mxu3 %v1075_v14 }
  0x21   :  { %235 = vmatpush.msrb.mxu0 %v1070_v13  ;;  %255 = vmatpush.msrb.mxu1 %v1084_v15 }
  0x22   :  { %322 = vmatpush.msrb.mxu2 %v1070_v13  ;;  %342 = vmatpush.msrb.mxu3 %v1084_v15 }
  0x23   :  { %402 = vmatpush.msra.mxu0 %v985_v0  ;;  %422 = vmatpush.msra.mxu1 %v1002_v3 }
  0x25   :  { %403 = vmatpush.msra.mxu0 %v990_v1  ;;  %423 = vmatpush.msra.mxu1 %v1009_v4 }
  0x27   :  { %404 = vmatpush.msra.mxu0 %v997_v2  ;;  %424 = vmatpush.msra.mxu1 %v1019_v6 }
  0x29   :  { %405 = vmatpush.msra.mxu0 %v1014_v5  ;;  %425 = vmatpush.msra.mxu1 %v1033_v8 }
  0x2b   :  { %406 = vmatpush.msra.mxu0 %v1028_v7  ;;  %426 = vmatpush.msra.mxu1 %v1047_v10 }
  0x2d   :  { %407 = vmatpush.msra.mxu0 %v1042_v9  ;;  %427 = vmatpush.msra.mxu1 %v1061_v12 }
  0x2f   :  { %408 = vmatpush.msra.mxu0 %v1056_v11  ;;  %428 = vmatpush.msra.mxu1 %v1075_v14 }
  0x31   :  { %409 = vmatpush.msra.mxu0 %v1070_v13  ;;  %429 = vmatpush.msra.mxu1 %v1084_v15 }
  0x8e   :  { %v63_v20 = vpop.f32.mrf.mxu0 }
  0x8f   :  { %v64_v21 = vadd.f32 %v63_v20, %v1145_v18  ;;  %v83_v30 = vpop.f32.mrf.mxu1  ;;  %v809_v20 = vld [vmem:[%s1366_s0 + $0x18] sm:$0xff] }
  0x90   :  { %v84_v34 = vadd.f32 %v83_v30, %v1151_v28 }
  0x91   :  { %v86_v22 = vadd.f32 %v64_v21, %v35_v19 }
  0x93   :  { %v807_v23 = vmul.f32 -1.442695, %v86_v22 }
  0x95   :  { %850 = vpow2.f32 %v807_v23 }
  0x9b   :  { %v851_v24 = vpop.eup %850 }
  0x9c   :  { %v90_v25 = vadd.f32 1.0, %v851_v24 }
  0x9e   :  { %852 = vrcp.f32 %v90_v25  ;;  %v102_v31 = vand.u32 2147483648, %v90_v25  ;;  %v100_v33 = vand.u32 2147483647, %v90_v25  ;;  %vm96_vm1 = vweird.f32 %v90_v25 }
  0xa0   :  { %v103_v36 = vor.u32 1.1754944e-38, %v102_v31  ;;  %vm101_vm3 = vcmp.eq.f32.partialorder %v100_v33, 8.507059e+37 }
  0xa4   :  { %v853_v26 = vpop.eup %852 }
  0xa5   :  { %v92_v27 = vmul.f32 %v853_v26, %v90_v25  ;;  %vm97_vm0 = vweird.f32 %v853_v26 }
  0xa6   :  { %vm98_vm2 = vmor %vm96_vm1, %vm97_vm0 }
  0xa7   :  { %v93_v29 = vsub.f32 1.0, %v92_v27 }
  0xa9   :  { %v94_v32 = vmul.f32 %v853_v26, %v93_v29 }
  0xab   :  { %v95_v35 = vadd.f32 %v853_v26, %v94_v32  ;;  %v813_v32 = vld [vmem:[%s1366_s0 + $0x20] sm:$0xff] }
  0xad   :  { %v99_v37 = vsel %vm98_vm2, %v853_v26, %v95_v35 }
  0xae   :  { %v104_v39 = vsel %vm101_vm3, %v103_v36, %v99_v37 }
  0xaf   :  { %v106_v40 = vmul.f32 %v104_v39, %v84_v34  ;;  %v109_v43 = vsub.f32 1.0, %v104_v39  ;;  %v115_v45 = vmul.f32 0.0, %v104_v39 }
  0xb1   :  { %v107_v41 = vadd.f32 %v106_v40, %v36_v38 }
  0xb3   :  { %854 = vtanh.f32 %v107_v41 }
  0xb9   :  { %v855_v42 = vpop.eup %854 }
  0xba   :  { %111 = vrot.lane.b32.xlu0 %v855_v42, %s951_s25 }
 0x12c   :  { %v112_v44 = vpop.permute.xlu0 %111 }
 0x12d   :  { %v114_v46 = vmul.f32 %v112_v44, %v109_v43 }
 0x12f   :  { %v1158_v47 = vadd.f32 %v115_v45, %v114_v46 }
 0x131   :  { %118 = vrot.lane.b32.xlu0 %v1158_v47, %s951_s25 }
 0x1a3   :  { %v119_v48 = vpop.permute.xlu0 %118 }
 0x1a4   :  { %122 = vst.msk [vmem:[#allocation3] sm:$0xff] %vm121_vm4, %v119_v48  ;;  %810 = vmatmul.msk.f32.vlgmr.msra.gmra.mxu2 %vm42_vm5, %v119_v48  ;;  %811 = vmatmul.msk.f32.vlgmr.msra.gmra.mxu3 %vm42_vm5, %v119_v48 }
 0x1a5   :  { %489 = vmatpush.msra.mxu2 %v985_v0  ;;  %509 = vmatpush.msra.mxu3 %v1002_v3 }
 0x1a7   :  { %490 = vmatpush.msra.mxu2 %v990_v1  ;;  %510 = vmatpush.msra.mxu3 %v1009_v4 }
 0x1a9   :  { %491 = vmatpush.msra.mxu2 %v997_v2  ;;  %511 = vmatpush.msra.mxu3 %v1019_v6 }
 0x1ab   :  { %492 = vmatpush.msra.mxu2 %v1014_v5  ;;  %512 = vmatpush.msra.mxu3 %v1033_v8 }
 0x1ad   :  { %493 = vmatpush.msra.mxu2 %v1028_v7  ;;  %513 = vmatpush.msra.mxu3 %v1047_v10 }
 0x1af   :  { %494 = vmatpush.msra.mxu2 %v1042_v9  ;;  %514 = vmatpush.msra.mxu3 %v1061_v12 }
 0x1b1   :  { %495 = vmatpush.msra.mxu2 %v1056_v11  ;;  %515 = vmatpush.msra.mxu3 %v1075_v14 }
 0x1b3   :  { %496 = vmatpush.msra.mxu2 %v1070_v13  ;;  %516 = vmatpush.msra.mxu3 %v1084_v15 }
 0x227   :  { %v150_v50 = vpop.f32.mrf.mxu2  ;;  %v170_v62 = vpop.f32.mrf.mxu3 }
 0x228   :  { %v151_v51 = vadd.f32 %v150_v50, %v1145_v18  ;;  %v171_v17 = vadd.f32 %v170_v62, %v1151_v28 }
 0x22a   :  { %v173_v52 = vadd.f32 %v808_v49, %v151_v51  ;;  %v814_v51 = vld [vmem:[%s1366_s0 + $0x28] sm:$0xff] }
 0x22c   :  { %v812_v53 = vmul.f32 -1.442695, %v173_v52 }
 0x22e   :  { %856 = vpow2.f32 %v812_v53 }
 0x234   :  { %v857_v54 = vpop.eup %856 }
 0x235   :  { %v177_v55 = vadd.f32 1.0, %v857_v54 }
 0x237   :  { %858 = vrcp.f32 %v177_v55  ;;  %v189_v59 = vand.u32 2147483648, %v177_v55  ;;  %v187_v61 = vand.u32 2147483647, %v177_v55  ;;  %vm183_vm7 = vweird.f32 %v177_v55 }
 0x239   :  { %v190_v16 = vor.u32 1.1754944e-38, %v189_v59  ;;  %vm188_vm9 = vcmp.eq.f32.partialorder %v187_v61, 8.507059e+37 }
 0x23d   :  { %v859_v56 = vpop.eup %858 }
 0x23e   :  { %v179_v57 = vmul.f32 %v859_v56, %v177_v55  ;;  %vm184_vm6 = vweird.f32 %v859_v56 }
 0x23f   :  { %vm185_vm8 = vmor %vm183_vm7, %vm184_vm6 }
 0x240   :  { %v180_v58 = vsub.f32 1.0, %v179_v57 }
 0x242   :  { %v181_v60 = vmul.f32 %v859_v56, %v180_v58 }
 0x244   :  { %v182_v63 = vadd.f32 %v859_v56, %v181_v60 }
 0x246   :  { %v186_v19 = vsel %vm185_vm8, %v859_v56, %v182_v63 }
 0x247   :  { %v191_v21 = vsel %vm188_vm9, %v190_v16, %v186_v19  ;;  %v819_v16 = vld [vmem:[%s1366_s0 + $0x38] sm:$0xff] }
 0x248   :  { %v193_v22 = vmul.f32 %v191_v21, %v171_v17  ;;  %v196_v25 = vsub.f32 1.0, %v191_v21  ;;  %v202_v27 = vmul.f32 %v191_v21, %v1158_v47 }
 0x24a   :  { %v194_v23 = vadd.f32 %v809_v20, %v193_v22 }
 0x24c   :  { %860 = vtanh.f32 %v194_v23 }
 0x252   :  { %v861_v24 = vpop.eup %860 }
 0x253   :  { %198 = vrot.lane.b32.xlu1 %v861_v24, %s951_s25 }
 0x2c5   :  { %v199_v26 = vpop.permute.xlu1 %198 }
 0x2c6   :  { %v201_v29 = vmul.f32 %v199_v26, %v196_v25 }
 0x2c8   :  { %v1191_v30 = vadd.f32 %v202_v27, %v201_v29  ;;  %v823_v29 = vld [vmem:[%s1366_s0 + $0x40] sm:$0xff] }
 0x2ca   :  { %205 = vrot.lane.b32.xlu1 %v1191_v30, %s951_s25 }
 0x33c   :  { %v206_v31 = vpop.permute.xlu1 %205 }
 0x33d   :  { %209 = vst.msk [vmem:[#allocation3 + $0x8] sm:$0xff] %vm121_vm4, %v206_v31  ;;  %815 = vmatmul.msk.f32.vlgmr.msrb.gmra.mxu0 %vm42_vm5, %v206_v31  ;;  %816 = vmatmul.msk.f32.vlgmr.msrb.gmra.mxu1 %vm42_vm5, %v206_v31 }
 0x33e   :  { %576 = vmatpush.msrb.mxu0 %v985_v0  ;;  %596 = vmatpush.msrb.mxu1 %v1002_v3 }
 0x340   :  { %577 = vmatpush.msrb.mxu0 %v990_v1  ;;  %597 = vmatpush.msrb.mxu1 %v1009_v4 }
 0x342   :  { %578 = vmatpush.msrb.mxu0 %v997_v2  ;;  %598 = vmatpush.msrb.mxu1 %v1019_v6 }
 0x344   :  { %579 = vmatpush.msrb.mxu0 %v1014_v5  ;;  %599 = vmatpush.msrb.mxu1 %v1033_v8 }
 0x346   :  { %580 = vmatpush.msrb.mxu0 %v1028_v7  ;;  %600 = vmatpush.msrb.mxu1 %v1047_v10 }
 0x348   :  { %581 = vmatpush.msrb.mxu0 %v1042_v9  ;;  %601 = vmatpush.msrb.mxu1 %v1061_v12 }
 0x34a   :  { %582 = vmatpush.msrb.mxu0 %v1056_v11  ;;  %602 = vmatpush.msrb.mxu1 %v1075_v14 }
 0x34c   :  { %583 = vmatpush.msrb.mxu0 %v1070_v13  ;;  %603 = vmatpush.msrb.mxu1 %v1084_v15 }
 0x3ba   :  { %v237_v33 = vpop.f32.mrf.mxu0  ;;  %v257_v45 = vpop.f32.mrf.mxu1 }
 0x3bb   :  { %v238_v34 = vadd.f32 %v237_v33, %v1145_v18  ;;  %v258_v49 = vadd.f32 %v257_v45, %v1151_v28 }
 0x3bd   :  { %v260_v35 = vadd.f32 %v813_v32, %v238_v34 }
 0x3bf   :  { %v817_v36 = vmul.f32 -1.442695, %v260_v35 }
 0x3c1   :  { %862 = vpow2.f32 %v817_v36 }
 0x3c7   :  { %v863_v37 = vpop.eup %862 }
 0x3c8   :  { %v264_v38 = vadd.f32 1.0, %v863_v37 }
 0x3ca   :  { %864 = vrcp.f32 %v264_v38  ;;  %v276_v42 = vand.u32 2147483648, %v264_v38  ;;  %v274_v44 = vand.u32 2147483647, %v264_v38  ;;  %vm270_vm11 = vweird.f32 %v264_v38 }
 0x3cc   :  { %v277_v48 = vor.u32 1.1754944e-38, %v276_v42  ;;  %vm275_vm13 = vcmp.eq.f32.partialorder %v274_v44, 8.507059e+37 }
 0x3d0   :  { %v865_v39 = vpop.eup %864 }
 0x3d1   :  { %v266_v40 = vmul.f32 %v865_v39, %v264_v38  ;;  %vm271_vm10 = vweird.f32 %v865_v39 }
 0x3d2   :  { %vm272_vm12 = vmor %vm270_vm11, %vm271_vm10 }
 0x3d3   :  { %v267_v41 = vsub.f32 1.0, %v266_v40 }
 0x3d5   :  { %v268_v43 = vmul.f32 %v865_v39, %v267_v41 }
 0x3d7   :  { %v269_v46 = vadd.f32 %v865_v39, %v268_v43 }
 0x3d9   :  { %v273_v50 = vsel %vm272_vm12, %v865_v39, %v269_v46 }
 0x3da   :  { %v278_v52 = vsel %vm275_vm13, %v277_v48, %v273_v50 }
 0x3db   :  { %v280_v53 = vmul.f32 %v278_v52, %v258_v49  ;;  %v283_v56 = vsub.f32 1.0, %v278_v52  ;;  %v289_v58 = vmul.f32 %v278_v52, %v1191_v30  ;;  %v824_v49 = vld [vmem:[%s1366_s0 + $0x48] sm:$0xff] }
 0x3dd   :  { %v281_v54 = vadd.f32 %v814_v51, %v280_v53 }
 0x3df   :  { %866 = vtanh.f32 %v281_v54 }
 0x3e5   :  { %v867_v55 = vpop.eup %866 }
 0x3e6   :  { %285 = vrot.lane.b32.xlu2 %v867_v55, %s951_s25 }
 0x440   :  { %v286_v57 = vpop.permute.xlu2 %285 }
 0x441   :  { %v288_v59 = vmul.f32 %v286_v57, %v283_v56 }
 0x443   :  { %v1224_v60 = vadd.f32 %v289_v58, %v288_v59 }
 0x445   :  { %292 = vrot.lane.b32.xlu2 %v1224_v60, %s951_s25 }
 0x49f   :  { %v293_v61 = vpop.permute.xlu2 %292 }
 0x4a0   :  { %296 = vst.msk [vmem:[#allocation3 + $0x10] sm:$0xff] %vm121_vm4, %v293_v61  ;;  %820 = vmatmul.msk.f32.vlgmr.msrb.gmra.mxu2 %vm42_vm5, %v293_v61  ;;  %821 = vmatmul.msk.f32.vlgmr.msrb.gmra.mxu3 %vm42_vm5, %v293_v61  ;;  %v828_v61 = vld [vmem:[%s1366_s0 + $0x50] sm:$0xff] }
 0x4a1   :  { %663 = vmatpush.msrb.mxu2 %v985_v0  ;;  %683 = vmatpush.msrb.mxu3 %v1002_v3  ;;  %v818_v0 = vld [vmem:[%s1366_s0 + $0x30] sm:$0xff] }
 0x4a3   :  { %664 = vmatpush.msrb.mxu2 %v990_v1  ;;  %684 = vmatpush.msrb.mxu3 %v1009_v4 }
 0x4a5   :  { %665 = vmatpush.msrb.mxu2 %v997_v2  ;;  %685 = vmatpush.msrb.mxu3 %v1019_v6 }
 0x4a7   :  { %666 = vmatpush.msrb.mxu2 %v1014_v5  ;;  %686 = vmatpush.msrb.mxu3 %v1033_v8 }
 0x4a9   :  { %667 = vmatpush.msrb.mxu2 %v1028_v7  ;;  %687 = vmatpush.msrb.mxu3 %v1047_v10 }
 0x4ab   :  { %668 = vmatpush.msrb.mxu2 %v1042_v9  ;;  %688 = vmatpush.msrb.mxu3 %v1061_v12 }
 0x4ad   :  { %669 = vmatpush.msrb.mxu2 %v1056_v11  ;;  %689 = vmatpush.msrb.mxu3 %v1075_v14 }
 0x4af   :  { %670 = vmatpush.msrb.mxu2 %v1070_v13  ;;  %690 = vmatpush.msrb.mxu3 %v1084_v15 }
 0x523   :  { %v324_v1 = vpop.f32.mrf.mxu2  ;;  %v344_v13 = vpop.f32.mrf.mxu3 }
 0x524   :  { %v325_v2 = vadd.f32 %v324_v1, %v1145_v18  ;;  %v345_v62 = vadd.f32 %v344_v13, %v1151_v28 }
 0x526   :  { %v347_v3 = vadd.f32 %v818_v0, %v325_v2 }
 0x528   :  { %v822_v4 = vmul.f32 -1.442695, %v347_v3 }
 0x52a   :  { %868 = vpow2.f32 %v822_v4 }
 0x530   :  { %v869_v5 = vpop.eup %868 }
 0x531   :  { %v351_v6 = vadd.f32 1.0, %v869_v5 }
 0x533   :  { %870 = vrcp.f32 %v351_v6  ;;  %v363_v10 = vand.u32 2147483648, %v351_v6  ;;  %v361_v12 = vand.u32 2147483647, %v351_v6  ;;  %vm357_vm15 = vweird.f32 %v351_v6 }
 0x535   :  { %v364_v15 = vor.u32 1.1754944e-38, %v363_v10  ;;  %vm362_vm1 = vcmp.eq.f32.partialorder %v361_v12, 8.507059e+37 }
 0x539   :  { %v871_v7 = vpop.eup %870 }
 0x53a   :  { %v353_v8 = vmul.f32 %v871_v7, %v351_v6  ;;  %vm358_vm14 = vweird.f32 %v871_v7 }
 0x53b   :  { %vm359_vm0 = vmor %vm357_vm15, %vm358_vm14 }
 0x53c   :  { %v354_v9 = vsub.f32 1.0, %v353_v8 }
 0x53e   :  { %v355_v11 = vmul.f32 %v871_v7, %v354_v9 }
 0x540   :  { %v356_v14 = vadd.f32 %v871_v7, %v355_v11 }
 0x542   :  { %v360_v63 = vsel %vm359_vm0, %v871_v7, %v356_v14 }
 0x543   :  { %v365_v17 = vsel %vm362_vm1, %v364_v15, %v360_v63  ;;  %v829_v63 = vld [vmem:[%s1366_s0 + $0x58] sm:$0xff] }
 0x544   :  { %v367_v19 = vmul.f32 %v365_v17, %v345_v62  ;;  %v370_v22 = vsub.f32 1.0, %v365_v17  ;;  %v376_v24 = vmul.f32 %v365_v17, %v1224_v60 }
 0x546   :  { %v368_v20 = vadd.f32 %v819_v16, %v367_v19 }
 0x548   :  { %872 = vtanh.f32 %v368_v20 }
 0x54e   :  { %v873_v21 = vpop.eup %872 }
 0x54f   :  { %372 = vrot.lane.b32.xlu0 %v873_v21, %s951_s25 }
 0x5c1   :  { %v373_v23 = vpop.permute.xlu0 %372 }
 0x5c2   :  { %v375_v25 = vmul.f32 %v373_v23, %v370_v22 }
 0x5c4   :  { %v1257_v26 = vadd.f32 %v376_v24, %v375_v25 }
 0x5c6   :  { %379 = vrot.lane.b32.xlu1 %v1257_v26, %s951_s25 }
 0x638   :  { %v380_v27 = vpop.permute.xlu1 %379 }
 0x639   :  { %383 = vst.msk [vmem:[#allocation3 + $0x18] sm:$0xff] %vm121_vm4, %v380_v27  ;;  %825 = vmatmul.msk.f32.vlgmr.msra.gmra.mxu0 %vm42_vm5, %v380_v27  ;;  %826 = vmatmul.msk.f32.vlgmr.msra.gmra.mxu1 %vm42_vm5, %v380_v27 }
 0x6b6   :  { %v411_v31 = vpop.f32.mrf.mxu0  ;;  %v431_v43 = vpop.f32.mrf.mxu1 }
 0x6b7   :  { %v412_v32 = vadd.f32 %v411_v31, %v1145_v18  ;;  %v432_v46 = vadd.f32 %v431_v43, %v1151_v28 }
 0x6b9   :  { %v434_v33 = vadd.f32 %v823_v29, %v412_v32  ;;  %v833_v29 = vld [vmem:[%s1366_s0 + $0x60] sm:$0xff] }
 0x6bb   :  { %v827_v34 = vmul.f32 -1.442695, %v434_v33 }
 0x6bd   :  { %874 = vpow2.f32 %v827_v34 }
 0x6c3   :  { %v875_v35 = vpop.eup %874 }
 0x6c4   :  { %v438_v36 = vadd.f32 1.0, %v875_v35 }
 0x6c6   :  { %876 = vrcp.f32 %v438_v36  ;;  %v450_v40 = vand.u32 2147483648, %v438_v36  ;;  %v448_v42 = vand.u32 2147483647, %v438_v36  ;;  %vm444_vm3 = vweird.f32 %v438_v36 }
 0x6c8   :  { %v451_v45 = vor.u32 1.1754944e-38, %v450_v40  ;;  %vm449_vm7 = vcmp.eq.f32.partialorder %v448_v42, 8.507059e+37 }
 0x6cc   :  { %v877_v37 = vpop.eup %876 }
 0x6cd   :  { %v440_v38 = vmul.f32 %v877_v37, %v438_v36  ;;  %vm445_vm2 = vweird.f32 %v877_v37 }
 0x6ce   :  { %vm446_vm6 = vmor %vm444_vm3, %vm445_vm2 }
 0x6cf   :  { %v441_v39 = vsub.f32 1.0, %v440_v38 }
 0x6d1   :  { %v442_v41 = vmul.f32 %v877_v37, %v441_v39 }
 0x6d3   :  { %v443_v44 = vadd.f32 %v877_v37, %v442_v41 }
 0x6d5   :  { %v447_v48 = vsel %vm446_vm6, %v877_v37, %v443_v44 }
 0x6d6   :  { %v452_v50 = vsel %vm449_vm7, %v451_v45, %v447_v48 }
 0x6d7   :  { %v454_v51 = vmul.f32 %v452_v50, %v432_v46  ;;  %v457_v54 = vsub.f32 1.0, %v452_v50  ;;  %v463_v56 = vmul.f32 %v452_v50, %v1257_v26 }
 0x6d9   :  { %v455_v52 = vadd.f32 %v824_v49, %v454_v51  ;;  %v834_v49 = vld [vmem:[%s1366_s0 + $0x68] sm:$0xff] }
 0x6db   :  { %878 = vtanh.f32 %v455_v52 }
 0x6e1   :  { %v879_v53 = vpop.eup %878 }
 0x6e2   :  { %459 = vrot.lane.b32.xlu2 %v879_v53, %s951_s25 }
 0x73c   :  { %v460_v55 = vpop.permute.xlu2 %459 }
 0x73d   :  { %v462_v57 = vmul.f32 %v460_v55, %v457_v54 }
 0x73f   :  { %v1274_v58 = vadd.f32 %v463_v56, %v462_v57 }
 0x741   :  { %466 = vrot.lane.b32.xlu0 %v1274_v58, %s951_s25 }
 0x7b3   :  { %v467_v59 = vpop.permute.xlu0 %466 }
 0x7b4   :  { %470 = vst.msk [vmem:[#allocation3 + $0x20] sm:$0xff] %vm121_vm4, %v467_v59  ;;  %830 = vmatmul.msk.f32.vlgmr.msra.gmra.mxu2 %vm42_vm5, %v467_v59  ;;  %831 = vmatmul.msk.f32.vlgmr.msra.gmra.mxu3 %vm42_vm5, %v467_v59 }
 0x837   :  { %v498_v0 = vpop.f32.mrf.mxu2  ;;  %v518_v12 = vpop.f32.mrf.mxu3 }
 0x838   :  { %v499_v1 = vadd.f32 %v498_v0, %v1145_v18  ;;  %v519_v15 = vadd.f32 %v518_v12, %v1151_v28 }
 0x83a   :  { %v521_v2 = vadd.f32 %v828_v61, %v499_v1 }
 0x83c   :  { %v832_v3 = vmul.f32 -1.442695, %v521_v2 }
 0x83e   :  { %880 = vpow2.f32 %v832_v3 }
 0x844   :  { %v881_v4 = vpop.eup %880 }
 0x845   :  { %v525_v5 = vadd.f32 1.0, %v881_v4  ;;  %v737_v4 = vld [vmem:[#allocation3 + $0x8] sm:$0xff] }
 0x847   :  { %882 = vrcp.f32 %v525_v5  ;;  %v537_v9 = vand.u32 2147483648, %v525_v5  ;;  %v535_v11 = vand.u32 2147483647, %v525_v5  ;;  %vm531_vm9 = vweird.f32 %v525_v5 }
 0x849   :  { %v538_v14 = vor.u32 1.1754944e-38, %v537_v9  ;;  %vm536_vm11 = vcmp.eq.f32.partialorder %v535_v11, 8.507059e+37 }
 0x84d   :  { %v883_v6 = vpop.eup %882 }
 0x84e   :  { %v527_v7 = vmul.f32 %v883_v6, %v525_v5  ;;  %vm532_vm8 = vweird.f32 %v883_v6 }
 0x84f   :  { %vm533_vm10 = vmor %vm531_vm9, %vm532_vm8 }
 0x850   :  { %v528_v8 = vsub.f32 1.0, %v527_v7 }
 0x852   :  { %v529_v10 = vmul.f32 %v883_v6, %v528_v8 }
 0x854   :  { %v530_v13 = vadd.f32 %v883_v6, %v529_v10  ;;  %v739_v10 = vld [vmem:[#allocation3 + $0x18] sm:$0xff] }
 0x856   :  { %v534_v62 = vsel %vm533_vm10, %v883_v6, %v530_v13  ;;  %v838_v13 = vld [vmem:[%s1366_s0 + $0x70] sm:$0xff] }
 0x857   :  { %v539_v16 = vsel %vm536_vm11, %v538_v14, %v534_v62 }
 0x858   :  { %v541_v17 = vmul.f32 %v539_v16, %v519_v15  ;;  %v544_v21 = vsub.f32 1.0, %v539_v16  ;;  %v550_v23 = vmul.f32 %v539_v16, %v1274_v58 }
 0x85a   :  { %v542_v19 = vadd.f32 %v829_v63, %v541_v17 }
 0x85c   :  { %884 = vtanh.f32 %v542_v19 }
 0x862   :  { %v885_v20 = vpop.eup %884 }
 0x863   :  { %546 = vrot.lane.b32.xlu1 %v885_v20, %s951_s25 }
 0x8d5   :  { %v547_v22 = vpop.permute.xlu1 %546 }
 0x8d6   :  { %v549_v24 = vmul.f32 %v547_v22, %v544_v21 }
 0x8d8   :  { %v1291_v25 = vadd.f32 %v550_v23, %v549_v24 }
 0x8da   :  { %553 = vrot.lane.b32.xlu2 %v1291_v25, %s951_s25 }
 0x934   :  { %v554_v27 = vpop.permute.xlu2 %553 }
 0x935   :  { %557 = vst.msk [vmem:[#allocation3 + $0x28] sm:$0xff] %vm121_vm4, %v554_v27  ;;  %835 = vmatmul.msk.f32.vlgmr.msrb.gmra.mxu0 %vm42_vm5, %v554_v27  ;;  %836 = vmatmul.msk.f32.vlgmr.msrb.gmra.mxu1 %vm42_vm5, %v554_v27 }
 0x9b2   :  { %v585_v31 = vpop.f32.mrf.mxu0  ;;  %v605_v43 = vpop.f32.mrf.mxu1 }
 0x9b3   :  { %v586_v32 = vadd.f32 %v585_v31, %v1145_v18  ;;  %v606_v46 = vadd.f32 %v605_v43, %v1151_v28  ;;  %v741_v43 = vld [vmem:[#allocation3 + $0x28] sm:$0xff] }
 0x9b5   :  { %v608_v33 = vadd.f32 %v833_v29, %v586_v32 }
 0x9b7   :  { %v837_v34 = vmul.f32 -1.442695, %v608_v33  ;;  %v839_v33 = vld [vmem:[%s1366_s0 + $0x78] sm:$0xff]  ;;  %s953_s0 = smov [#allocation5]  }
 0x9b9   :  { %886 = vpow2.f32 %v837_v34 }
 0x9bf   :  { %v887_v35 = vpop.eup %886 }
 0x9c0   :  { %v612_v36 = vadd.f32 1.0, %v887_v35 }
 0x9c2   :  { %888 = vrcp.f32 %v612_v36  ;;  %v624_v40 = vand.u32 2147483648, %v612_v36  ;;  %v622_v42 = vand.u32 2147483647, %v612_v36  ;;  %vm618_vm13 = vweird.f32 %v612_v36 }
 0x9c4   :  { %v625_v45 = vor.u32 1.1754944e-38, %v624_v40  ;;  %vm623_vm15 = vcmp.eq.f32.partialorder %v622_v42, 8.507059e+37 }
 0x9c8   :  { %v889_v37 = vpop.eup %888 }
 0x9c9   :  { %v614_v38 = vmul.f32 %v889_v37, %v612_v36  ;;  %vm619_vm12 = vweird.f32 %v889_v37 }
 0x9ca   :  { %vm620_vm14 = vmor %vm618_vm13, %vm619_vm12 }
 0x9cb   :  { %v615_v39 = vsub.f32 1.0, %v614_v38 }
 0x9cd   :  { %v616_v41 = vmul.f32 %v889_v37, %v615_v39 }
 0x9cf   :  { %v617_v44 = vadd.f32 %v889_v37, %v616_v41 }
 0x9d1   :  { %v621_v48 = vsel %vm620_vm14, %v889_v37, %v617_v44 }
 0x9d2   :  { %v626_v50 = vsel %vm623_vm15, %v625_v45, %v621_v48 }
 0x9d3   :  { %v628_v51 = vmul.f32 %v626_v50, %v606_v46  ;;  %v631_v54 = vsub.f32 1.0, %v626_v50  ;;  %v637_v56 = vmul.f32 %v626_v50, %v1291_v25  ;;  %v736_v50 = vld [vmem:[#allocation3] sm:$0xff] }
 0x9d5   :  { %v629_v52 = vadd.f32 %v834_v49, %v628_v51 }
 0x9d7   :  { %890 = vtanh.f32 %v629_v52 }
 0x9dd   :  { %v891_v53 = vpop.eup %890 }
 0x9de   :  { %633 = vrot.lane.b32.xlu0 %v891_v53, %s951_s25 }
 0x9e6   :  { %123 = vrot.lane.b32.xlu0 %v1158_v47, %s952_s23 }
 0x9ee   :  { %384 = vrot.lane.b32.xlu0 %v1257_v26, %s952_s23  ;;  %v740_v26 = vld [vmem:[#allocation3 + $0x20] sm:$0xff] }
 0xa50   :  { %v634_v55 = vpop.permute.xlu0 %633 }
 0xa51   :  { %v636_v57 = vmul.f32 %v634_v55, %v631_v54 }
 0xa53   :  { %v1312_v59 = vadd.f32 %v637_v56, %v636_v57 }
 0xa55   :  { %645 = vrot.lane.b32.xlu0 %v1312_v59, %s952_s23  ;;  %640 = vrot.lane.b32.xlu1 %v1312_v59, %s951_s25 }
 0xa58   :  { %v124_v61 = vpop.permute.xlu0 %123 }
 0xa59   :  { %127 = vst.msk [vmem:[#allocation2 + $0x38] sm:$0xff] %vm121_vm4, %v124_v61 }
 0xa5d   :  { %210 = vrot.lane.b32.xlu1 %v1191_v30, %s952_s23 }
 0xa60   :  { %v385_v47 = vpop.permute.xlu0 %384  ;;  %v751_v55 = vld [vmem:[#allocation2 + $0x38] sm:$0xff] }
 0xa61   :  { %388 = vst.msk [vmem:[#allocation2 + $0x20] sm:$0xff] %vm121_vm4, %v385_v47 }
 0xa65   :  { %471 = vrot.lane.b32.xlu1 %v1274_v58, %s952_s23 }
 0xa68   :  { %v748_v0 = vld [vmem:[#allocation2 + $0x20] sm:$0xff] }
 0xa69   :  { %v756_v1 = vadd.f32 %v748_v0, %v740_v26 }
 0xa6b   :  { %764 = vst.msk [vmem:[#allocation3 + $0x20] sm:$0xff] %vm121_vm4, %v756_v1 }
 0xac7   :  { %v641_v2 = vpop.permute.xlu1 %640  ;;  %v646_v3 = vpop.permute.xlu0 %645 }
 0xac8   :  { %644 = vst.msk [vmem:[#allocation3 + $0x30] sm:$0xff] %vm121_vm4, %v641_v2  ;;  %840 = vmatmul.msk.f32.vlgmr.msrb.gmra.mxu2 %vm42_vm5, %v641_v2  ;;  %841 = vmatmul.msk.f32.vlgmr.msrb.gmra.mxu3 %vm42_vm5, %v641_v2 }
 0xac9   :  { %649 = vst.msk [vmem:[#allocation2 + $0x8] sm:$0xff] %vm121_vm4, %v646_v3 }
 0xacf   :  { %v211_v30 = vpop.permute.xlu1 %210  ;;  %v742_v6 = vld [vmem:[#allocation3 + $0x30] sm:$0xff] }
 0xad0   :  { %v745_v5 = vld [vmem:[#allocation2 + $0x8] sm:$0xff]  ;;  %214 = vst.msk [vmem:[#allocation2 + $0x30] sm:$0xff] %vm121_vm4, %v211_v30 }
 0xad1   :  { %v753_v58 = vadd.f32 %v745_v5, %v737_v4 }
 0xad3   :  { %761 = vst.msk [vmem:[#allocation3 + $0x8] sm:$0xff] %vm121_vm4, %v753_v58 }
 0xad7   :  { %v750_v7 = vld [vmem:[#allocation2 + $0x30] sm:$0xff]  ;;  %v472_v8 = vpop.permute.xlu1 %471 }
 0xad8   :  { %v758_v9 = vadd.f32 %v750_v7, %v742_v6  ;;  %475 = vst.msk [vmem:[#allocation2 + $0x18] sm:$0xff] %vm121_vm4, %v472_v8 }
 0xada   :  { %766 = vst.msk [vmem:[#allocation3 + $0x30] sm:$0xff] %vm121_vm4, %v758_v9 }
 0xadf   :  { %v747_v11 = vld [vmem:[#allocation2 + $0x18] sm:$0xff] }
 0xae0   :  { %v755_v12 = vadd.f32 %v747_v11, %v739_v10 }
 0xae2   :  { %763 = vst.msk [vmem:[#allocation3 + $0x18] sm:$0xff] %vm121_vm4, %v755_v12 }
 0xb4b   :  { %v672_v14 = vpop.f32.mrf.mxu2  ;;  %v692_v27 = vpop.f32.mrf.mxu3 }
 0xb4c   :  { %v673_v15 = vadd.f32 %v672_v14, %v1145_v18  ;;  %v693_v18 = vadd.f32 %v692_v27, %v1151_v28 }
 0xb4e   :  { %v695_v62 = vadd.f32 %v838_v13, %v673_v15 }
 0xb50   :  { %v842_v63 = vmul.f32 -1.442695, %v695_v62 }
 0xb52   :  { %892 = vpow2.f32 %v842_v63 }
 0xb58   :  { %v893_v16 = vpop.eup %892 }
 0xb59   :  { %v699_v17 = vadd.f32 1.0, %v893_v16 }
 0xb5b   :  { %894 = vrcp.f32 %v699_v17  ;;  %v711_v22 = vand.u32 2147483648, %v699_v17  ;;  %v709_v24 = vand.u32 2147483647, %v699_v17  ;;  %vm705_vm0 = vweird.f32 %v699_v17 }
 0xb5d   :  { %v712_v31 = vor.u32 1.1754944e-38, %v711_v22  ;;  %vm710_vm2 = vcmp.eq.f32.partialorder %v709_v24, 8.507059e+37 }
 0xb61   :  { %v895_v19 = vpop.eup %894 }
 0xb62   :  { %v701_v20 = vmul.f32 %v895_v19, %v699_v17  ;;  %vm706_vm5 = vweird.f32 %v895_v19 }
 0xb63   :  { %vm707_vm1 = vmor %vm705_vm0, %vm706_vm5 }
 0xb64   :  { %v702_v21 = vsub.f32 1.0, %v701_v20 }
 0xb66   :  { %v703_v23 = vmul.f32 %v895_v19, %v702_v21 }
 0xb68   :  { %v704_v29 = vadd.f32 %v895_v19, %v703_v23 }
 0xb6a   :  { %v708_v32 = vsel %vm707_vm1, %v895_v19, %v704_v29 }
 0xb6b   :  { %v713_v34 = vsel %vm710_vm2, %v712_v31, %v708_v32 }
 0xb6c   :  { %v715_v35 = vmul.f32 %v713_v34, %v693_v18  ;;  %v718_v28 = vsub.f32 1.0, %v713_v34  ;;  %v724_v39 = vmul.f32 %v713_v34, %v1312_v59 }
 0xb6e   :  { %v716_v36 = vadd.f32 %v839_v33, %v715_v35 }
 0xb70   :  { %896 = vtanh.f32 %v716_v36 }
 0xb76   :  { %v897_v37 = vpop.eup %896 }
 0xb77   :  { %720 = vrot.lane.b32.xlu2 %v897_v37, %s951_s25 }
 0xb7f   :  { %297 = vrot.lane.b32.xlu2 %v1224_v60, %s952_s23 }
 0xb87   :  { %558 = vrot.lane.b32.xlu2 %v1291_v25, %s952_s23  ;;  %v738_v25 = vld [vmem:[#allocation3 + $0x10] sm:$0xff] }
 0xbd1   :  { %v721_v38 = vpop.permute.xlu2 %720 }
 0xbd2   :  { %v723_v40 = vmul.f32 %v721_v38, %v718_v28 }
 0xbd4   :  { %v725_v41 = vadd.f32 %v724_v39, %v723_v40 }
 0xbd6   :  { %732 = vrot.lane.b32.xlu2 %v725_v41, %s952_s23  ;;  %727 = vrot.lane.b32.xlu1 %v725_v41, %s951_s25  ;;  %s788_s25 = sshll.u32 %s953_s0, 4  ;;  %s789_s25 = int_to_ptr.vmem [resolvable:$true] %s788_s25 }
 0xbd9   :  { %v298_v42 = vpop.permute.xlu2 %297 }
 0xbda   :  { %301 = vst.msk [vmem:[#allocation2 + $0x28] sm:$0xff] %vm121_vm4, %v298_v42 }
 0xbe1   :  { %v749_v44 = vld [vmem:[#allocation2 + $0x28] sm:$0xff]  ;;  %v559_v45 = vpop.permute.xlu2 %558 }
 0xbe2   :  { %v757_v60 = vadd.f32 %v749_v44, %v741_v43  ;;  %562 = vst.msk [vmem:[#allocation2 + $0x10] sm:$0xff] %vm121_vm4, %v559_v45 }
 0xbe4   :  { %765 = vst.msk [vmem:[#allocation3 + $0x28] sm:$0xff] %vm121_vm4, %v757_v60 }
 0xbe9   :  { %v746_v46 = vld [vmem:[#allocation2 + $0x10] sm:$0xff] }
 0xbea   :  { %v754_v48 = vadd.f32 %v746_v46, %v738_v25 }
 0xbec   :  { %762 = vst.msk [vmem:[#allocation3 + $0x10] sm:$0xff] %vm121_vm4, %v754_v48 }
 0xc30   :  { %v733_v49 = vpop.permute.xlu2 %732 }
 0xc31   :  { %735 = vst.msk [vmem:[#allocation2] sm:$0xff] %vm121_vm4, %v733_v49 }
 0xc32   :  { %770 = vst.msk [vmem:[#allocation5 + $0x8] sm:$0xff] %vm121_vm4, %v733_v49 }
 0xc38   :  { %v744_v51 = vld [vmem:[#allocation2] sm:$0xff] }
 0xc39   :  { %v752_v52 = vadd.f32 %v744_v51, %v736_v50 }
 0xc3b   :  { %760 = vst.msk [vmem:[#allocation3] sm:$0xff] %vm121_vm4, %v752_v52 }
 0xc48   :  { %v728_v53 = vpop.permute.xlu1 %727 }
 0xc49   :  { %731 = vst.msk [vmem:[#allocation3 + $0x38] sm:$0xff] %vm121_vm4, %v728_v53 }
 0xc4a   :  { %768 = vst.msk [vmem:[#allocation5] sm:$0xff] %vm121_vm4, %v728_v53 }
 0xc4b   :  { %796 = dma.vmem_to_hbm [thread:$0]  %s789_s25, 256, %s791_s30, [#allocation6], %s954_s5, %s954_s5, %s955_s6  }
 0xc50   :  { %v743_v54 = vld [vmem:[#allocation3 + $0x38] sm:$0xff] }
 0xc51   :  { %v759_v56 = vadd.f32 %v751_v55, %v743_v54 }
 0xc53   :  { %767 = vst.msk [vmem:[#allocation3 + $0x38] sm:$0xff] %vm121_vm4, %v759_v56 }
 0xc54   :  { %783 = dma.vmem_to_hbm [thread:$0]  %s776_s8, 1024, %s778_s11, [#allocation4], %s954_s5, %s954_s5, %s955_s6  }
 0xc55   :  { %946 = dma.done.wait [#allocation4], 1024  }
 0xc56   :  { %947 = vsyncadd [#allocation4], 4294966272 }
 0xc57   :  { %948 = dma.done.wait [#allocation6], 256  }
 0xc58   :  { %949 = vsyncadd [#allocation6], 4294967040 }
 0xc59   :  { %805 = vsyncpa [#allocation4], 1 }
 0xc5a   :  { %806 = vsyncpa [#allocation6], 1 }

</bundles_post_ra>
